<compile_context>
chip_gen: v6e
topology: v6e:2x2x1
jax: 0.10.0
libtpu: 0.0.40
codegen_flags: <defaults>
</compile_context>

<pallas_src>
import functools

import jax
import jax.numpy as jnp
from jax.experimental import pallas as pl
from jax.experimental.pallas import tpu as pltpu

HI = jax.lax.Precision.HIGHEST
EPS = 1e-4  # Norm.epsilon


def _pick_tile(n, target=512):
    """Largest multiple of 16 that divides n and is <= target (fallback: n)."""
    best = None
    t = 16
    while t <= min(n, target):
        if n % t == 0:
            best = t
        t += 16
    return best if best is not None else n


def _permute_pool_major(x, s):
    """NCHW -> (B, N, C) with pool-window-major row order (host glue)."""
    B, C, H, W = x.shape
    Hs, Ws = H // s, W // s
    xp = x.reshape(B, C, Hs, s, Ws, s)
    xp = jnp.transpose(xp, (0, 3, 5, 2, 4, 1)).reshape(B, H * W, C)
    return xp


def _vmem_limit(*byte_terms, headroom=8 << 20, cap=64 << 20):
    est = int(sum(byte_terms))
    return int(min(cap, 2 * est + headroom))


# ----------------------------------------------------------------------------
# Kernel A: fused [phi|g] 1x1 conv + max-pool pre-pass.
# Grid = (B, s*s).  x rows for pool-window d are the contiguous block d of
# size nsub, so pooling is a running max across the d axis in VMEM scratch.
# Outputs are four zero-lane-padded (B, nsub_pad, 2*Ci) bf16 arrays.
# ----------------------------------------------------------------------------
def _pool_kernel(xs_ref, xt_ref, wpg_s_ref, bpg_s_ref, wpg_t_ref, bpg_t_ref,
                 phis_ref, gs_ref, phit_ref, gt_ref,
                 pool_s, pool_t):
    d = pl.program_id(1)
    nsub, c2 = pool_s.shape
    ci = c2 // 2
    pad = phis_ref.shape[1] - nsub

    def conv(x_ref, w_ref, b_ref):
        return (jnp.dot(x_ref[0], w_ref[...],
                        preferred_element_type=jnp.float32)
                + b_ref[...]).astype(jnp.bfloat16)

    c_s = conv(xs_ref, wpg_s_ref, bpg_s_ref)   # (nsub, 128) = [g_s  | phi_s]
    c_t = conv(xt_ref, wpg_t_ref, bpg_t_ref)   # (nsub, 128) = [phi_t| g_t ]

    @pl.when(d == 0)
    def _():
        pool_s[...] = c_s
        pool_t[...] = c_t

    @pl.when(d > 0)
    def _():
        pool_s[...] = jnp.maximum(pool_s[...], c_s)
        pool_t[...] = jnp.maximum(pool_t[...], c_t)

    @pl.when(d == pl.num_programs(1) - 1)
    def _():
        lane = jax.lax.broadcasted_iota(jnp.int32, (nsub, c2), 1)
        lo = lane < ci
        ps = pool_s[...]
        pt = pool_t[...]
        zero = jnp.zeros_like(ps)

        def padded(v):
            if pad > 0:
                return jnp.concatenate(
                    [v, jnp.zeros((pad, c2), v.dtype)], axis=0)
            return v

        gs_ref[0] = padded(jnp.where(lo, ps, zero))     # [g_s   | 0    ]
        phis_ref[0] = padded(jnp.where(lo, zero, ps))   # [0     | phi_s]
        phit_ref[0] = padded(jnp.where(lo, pt, zero))   # [phi_t | 0    ]
        gt_ref[0] = padded(jnp.where(lo, zero, pt))     # [0     | g_t  ]


# ----------------------------------------------------------------------------
# Kernel B: fused student+teacher NonLocalBlockND + adaptation + ReLU + Norm
# + squared-diff partial reduction.  Grid = (N//tq "parallel", B "arbitrary").
# ----------------------------------------------------------------------------
def _kd_loss_kernel(xs_ref, xt_ref,
                    phis_ref, gs_ref, phit_ref, gt_ref,
                    wtr_s_ref, btr_s_ref, wtr_t_ref, btr_t_ref, wblk_ref,
                    out_ref, acts_buf, *, ci):
    b = pl.program_id(1)
    nb = pl.num_programs(1)
    tq = xs_ref.shape[1]

    # Fused 1x1 convs: student [reduct(+adapt) | theta/nsub],
    #                  teacher [theta/nsub | reduct]  (f32, biases folded in).
    tr_s = jnp.dot(xs_ref[0], wtr_s_ref[...],
                   preferred_element_type=jnp.float32) + btr_s_ref[...]
    tr_t = jnp.dot(xt_ref[0], wtr_t_ref[...],
                   preferred_element_type=jnp.float32) + btr_t_ref[...]

    # Attention scores: full 128-wide contraction against zero-padded phi, so
    # the reduct half of tr is masked by the zero lanes (no 64-lane slices).
    dn = (((1,), (1,)), ((), ()))
    f_s = jax.lax.dot_general(tr_s.astype(jnp.bfloat16), phis_ref[b],
                              dimension_numbers=dn,
                              preferred_element_type=jnp.float32)
    f_t = jax.lax.dot_general(tr_t.astype(jnp.bfloat16), phit_ref[b],
                              dimension_numbers=dn,
                              preferred_element_type=jnp.float32)

    # y = [y_s | y_t] directly from the complementary-lane-padded g arrays.
    y = (jnp.dot(f_s.astype(jnp.bfloat16), gs_ref[b],
                 preferred_element_type=jnp.float32)
         + jnp.dot(f_t.astype(jnp.bfloat16), gt_ref[b],
                   preferred_element_type=jnp.float32))

    # Block-diagonal W(+adapt) matmul: [y_s @ wWf_s | y_t @ wWf_t].
    wz = jnp.dot(y.astype(jnp.bfloat16), wblk_ref[...],
                 preferred_element_type=jnp.float32)

    # [red_s | red_t] by a full-width lane select (red_s in low lanes of tr_s,
    # red_t in high lanes of tr_t); then ReLU of Norm at 128-lane width.
    lane = jax.lax.broadcasted_iota(jnp.int32, (tq, 2 * ci), 1)
    red = jnp.where(lane < ci, tr_s, tr_t)
    acts_buf[b] = jnp.maximum(wz + red, 0.0)

    # Last batch element of this query tile: Norm denominator + loss partial.
    @pl.when(b == nb - 1)
    def _():
        a = acts_buf[...]                                  # (B, tq, 2Ci) f32
        den = jnp.sum(a, axis=0, keepdims=True) + EPS      # sum over batch
        r = (a * pl.reciprocal(den, approx=True)).reshape(-1, 2 * ci)
        # lanes [0:ci] hold s - t, lanes [ci:2ci] hold t - s -> 0.5*sum(d^2).
        d = r - pltpu.roll(r, shift=ci, axis=1)
        out_ref[0] = 0.5 * jnp.sum((d * d).reshape(-1, 8, 2 * ci), axis=0)


# ----------------------------------------------------------------------------
# Wrapper: host-side weight folding, the two pallas_calls, final sqrt.
# ----------------------------------------------------------------------------
def nonlocal_block_loss(x_s, x_t, i, ps, pt, wa, ba, tq=None):
    strides = (8, 4, 2, 2, 2)
    s = strides[i]
    B, C, H, W = x_s.shape
    Ci = wa.shape[0]
    assert H % s == 0 and W % s == 0
    Hs, Ws = H // s, W // s
    nsub, s2, N = Hs * Ws, s * s, H * W
    assert nsub % 8 == 0, "pooled row count must be sublane aligned"
    nsub_pad = ((nsub + 127) // 128) * 128
    if tq is None:
        tq = _pick_tile(N, 512)
    assert N % tq == 0 and tq % 16 == 0
    nq = N // tq
    c2 = 2 * Ci

    xs = _permute_pool_major(x_s, s).astype(jnp.bfloat16)
    xt = _permute_pool_major(x_t, s).astype(jnp.bfloat16)

    # ---- host-side weight folding (tiny matmuls on parameters) ----
    inv = 1.0 / nsub
    waT = wa.T
    # pool branch fused convs:  student [g | phi],  teacher [phi | g]
    wpg_s = jnp.concatenate([ps['wg'].T, ps['wp'].T], axis=1).astype(jnp.bfloat16)
    bpg_s = jnp.concatenate([ps['bg'], ps['bp']])[None, :].astype(jnp.float32)
    wpg_t = jnp.concatenate([pt['wp'].T, pt['wg'].T], axis=1).astype(jnp.bfloat16)
    bpg_t = jnp.concatenate([pt['bp'], pt['bg']])[None, :].astype(jnp.float32)
    # query branch: fold 1/nsub into theta, fold W-bias / reduct-bias / adapt
    # into the reduct columns (student) so the kernel epilogue is add + relu.
    wr_s = ps['wr'].T @ waT
    b_s = (ps['bW'] + ps['br']) @ waT + ba
    wW_s = ps['wW'].T @ waT
    wr_t = pt['wr'].T
    b_t = pt['bW'] + pt['br']
    wW_t = pt['wW'].T
    wtr_s = jnp.concatenate([wr_s, ps['wt'].T * inv], axis=1).astype(jnp.bfloat16)
    btr_s = jnp.concatenate([b_s, ps['bt'] * inv])[None, :].astype(jnp.float32)
    wtr_t = jnp.concatenate([pt['wt'].T * inv, wr_t], axis=1).astype(jnp.bfloat16)
    btr_t = jnp.concatenate([pt['bt'] * inv, b_t])[None, :].astype(jnp.float32)
    wblk = jnp.zeros((c2, c2), jnp.float32)
    wblk = wblk.at[:Ci, :Ci].set(wW_s).at[Ci:, Ci:].set(wW_t).astype(jnp.bfloat16)

    # ---- kernel A: pooled phi/g pre-pass ----
    def cpool(shape):
        return pl.BlockSpec(shape, lambda b_, d_, _n=len(shape): (0,) * _n)

    pool_vmem = _vmem_limit(
        2 * 2 * nsub * C * 2,              # streamed x blocks (double-buffered)
        4 * 2 * nsub_pad * c2 * 2,         # pooled outputs
        2 * (C * c2 + c2) * 2 * 2,         # fused conv weights
        2 * nsub * c2 * 2,                 # pooling scratch
    )
    phis, gs, phit, gt = pl.pallas_call(
        _pool_kernel,
        out_shape=[jax.ShapeDtypeStruct((B, nsub_pad, c2), jnp.bfloat16)] * 4,
        grid=(B, s2),
        in_specs=[
            pl.BlockSpec((1, nsub, C), lambda b_, d_: (b_, d_, 0)),
            pl.BlockSpec((1, nsub, C), lambda b_, d_: (b_, d_, 0)),
            cpool((C, c2)), cpool((1, c2)), cpool((C, c2)), cpool((1, c2)),
        ],
        out_specs=[pl.BlockSpec((1, nsub_pad, c2), lambda b_, d_: (b_, 0, 0))] * 4,
        scratch_shapes=[pltpu.VMEM((nsub, c2), jnp.bfloat16)] * 2,
        compiler_params=pltpu.CompilerParams(
            dimension_semantics=("parallel", "arbitrary"),
            vmem_limit_bytes=pool_vmem),
    )(xs, xt, wpg_s, bpg_s, wpg_t, bpg_t)

    # ---- kernel B: fused non-local + norm + loss partial ----
    def cmain(shape):
        return pl.BlockSpec(shape, lambda q_, b_, _n=len(shape): (0,) * _n)

    main_vmem = _vmem_limit(
        2 * 2 * tq * C * 2,                # streamed x tiles (double-buffered)
        4 * 2 * B * nsub_pad * c2 * 2,     # resident pooled arrays
        (2 * C * c2 + 2 * c2 + c2 * c2) * 2 * 2,   # weights
        B * tq * c2 * 4,                   # act scratch
        2 * 8 * c2 * 4,                    # partial output
    )
    partial = pl.pallas_call(
        functools.partial(_kd_loss_kernel, ci=Ci),
        out_shape=jax.ShapeDtypeStruct((nq, 8, c2), jnp.float32),
        grid=(nq, B),
        in_specs=[
            pl.BlockSpec((1, tq, C), lambda q_, b_: (b_, q_, 0)),
            pl.BlockSpec((1, tq, C), lambda q_, b_: (b_, q_, 0)),
            cmain((B, nsub_pad, c2)), cmain((B, nsub_pad, c2)),
            cmain((B, nsub_pad, c2)), cmain((B, nsub_pad, c2)),
            cmain((C, c2)), cmain((1, c2)), cmain((C, c2)), cmain((1, c2)),
            cmain((c2, c2)),
        ],
        out_specs=pl.BlockSpec((1, 8, c2), lambda q_, b_: (q_, 0, 0)),
        scratch_shapes=[pltpu.VMEM((B, tq, c2), jnp.float32)],
        compiler_params=pltpu.CompilerParams(
            dimension_semantics=("parallel", "arbitrary"),
            vmem_limit_bytes=main_vmem),
    )(xs, xt, phis, gs, phit, gt, wtr_s, btr_s, wtr_t, btr_t, wblk)

    # host glue: reduce the per-tile partials and take the sqrt.
    return jnp.sqrt(jnp.sum(partial))


# ----------------------------------------------------------------------------
# Deterministic parameter construction (synthetic; no checkpoint load).
# Conv2d 1x1 weights stored as (C_out, C_in) (kernel dims of size 1 dropped).
# NOTE: the module initializes W to zero; we use small nonzero values here so
# the test actually exercises the fused attention path (forward semantics do
# not depend on init values).
# ----------------------------------------------------------------------------
def make_block_params(key, c_in, c_inter, scale=0.05):
    ks = jax.random.split(key, 10)
    return {
        'wt': jax.random.normal(ks[0], (c_inter, c_in), jnp.float32) * scale,
        'bt': jax.random.normal(ks[1], (c_inter,), jnp.float32) * scale,
        'wp': jax.random.normal(ks[2], (c_inter, c_in), jnp.float32) * scale,
        'bp': jax.random.normal(ks[3], (c_inter,), jnp.float32) * scale,
        'wg': jax.random.normal(ks[4], (c_inter, c_in), jnp.float32) * scale,
        'bg': jax.random.normal(ks[5], (c_inter,), jnp.float32) * scale,
        'wr': jax.random.normal(ks[6], (c_inter, c_in), jnp.float32) * scale,
        'br': jax.random.normal(ks[7], (c_inter,), jnp.float32) * scale,
        'wW': jax.random.normal(ks[8], (c_inter, c_inter), jnp.float32) * scale,
        'bW': jax.random.normal(ks[9], (c_inter,), jnp.float32) * scale,
    }


# ----------------------------------------------------------------------------
# Pure-JAX reference (NCHW, mirrors the PyTorch forward) for validation.
# ----------------------------------------------------------------------------
def _conv1x1_ref(x, w, b):
    return jnp.einsum('bchw,oc->bohw', x, w, precision=HI) + b[None, :, None, None]


def _maxpool_ref(x, s):
    B, C, H, W = x.shape
    return jnp.max(x.reshape(B, C, H // s, s, W // s, s), axis=(3, 5))


def nonlocal_block_ref(x, p, s):
    B, C, H, W = x.shape
    Ci = p['wt'].shape[0]
    gx = _maxpool_ref(_conv1x1_ref(x, p['wg'], p['bg']), s).reshape(B, Ci, -1)
    gx = jnp.transpose(gx, (0, 2, 1))
    th = _conv1x1_ref(x, p['wt'], p['bt']).reshape(B, Ci, -1)
    th = jnp.transpose(th, (0, 2, 1))
    ph = _maxpool_ref(_conv1x1_ref(x, p['wp'], p['bp']), s).reshape(B, Ci, -1)
    f = jnp.matmul(th, ph, precision=HI)
    f = f / f.shape[-1]
    y = jnp.matmul(f, gx, precision=HI)
    y = jnp.transpose(y, (0, 2, 1)).reshape(B, Ci, H, W)
    wy = _conv1x1_ref(y, p['wW'], p['bW'])
    return wy + _conv1x1_ref(x, p['wr'], p['br'])


def loss_ref(x_s, x_t, i, ps, pt, wa, ba):
    s = (8, 4, 2, 2, 2)[i]
    zs = nonlocal_block_ref(x_s, ps, s)
    zt = nonlocal_block_ref(x_t, pt, s)
    sr = jnp.maximum(_conv1x1_ref(zs, wa, ba), 0.0)
    sr = sr / (jnp.sum(sr, axis=0) + EPS)
    tr = jnp.maximum(zt, 0.0)
    tr = tr / (jnp.sum(tr, axis=0) + EPS)
    return jnp.sqrt(jnp.sum((sr - tr) ** 2))


if __name__ == "__main__":
    # Small shapes consistent with the module (inter/out_channels = 64).
    B, C, CI, H, W = 2, 128, 64, 16, 16
    i = 2  # NonLocalBlockND with downsample_stride=2

    key = jax.random.PRNGKey(0)
    k_xs, k_xt, k_ps, k_pt, k_pa = jax.random.split(key, 5)
    x_s = jax.random.normal(k_xs, (B, C, H, W), jnp.float32)
    x_t = jax.random.normal(k_xt, (B, C, H, W), jnp.float32)

    params_s = make_block_params(k_ps, C, CI)   # student_non_local[i]
    params_t = make_block_params(k_pt, C, CI)   # teacher_non_local[i]
    ka1, ka2 = jax.random.split(k_pa)
    wa = jax.random.normal(ka1, (CI, CI), jnp.float32) * 0.05   # non_local_adaptation[i]
    ba = jax.random.normal(ka2, (CI,), jnp.float32) * 0.05

    # tq=128 forces 2 query tiles per batch -> exercises the per-tile loss
    # partials, the resident pooled blocks, and the batch-buffered Norm path.
    loss = nonlocal_block_loss(x_s, x_t, i, params_s, params_t, wa, ba, tq=128)
    loss = jax.block_until_ready(loss)

    ref = loss_ref(x_s, x_t, i, params_s, params_t, wa, ba)
    assert jnp.isfinite(loss), loss
    assert jnp.allclose(loss, ref, rtol=2e-2, atol=1e-3), (float(loss), float(ref))
    print("KERNEL_OK")
</pallas_src>

<mosaic_0001>
module attributes {stable_mosaic.version = 11 : i64} {
  func.func @_pool_kernel(%arg0: i32, %arg1: i32, %arg2: memref<1x64x128xbf16, #tpu.memory_space<vmem>>, %arg3: memref<1x64x128xbf16, #tpu.memory_space<vmem>>, %arg4: memref<128x128xbf16, #tpu.memory_space<vmem>>, %arg5: memref<1x128xf32, #tpu.memory_space<vmem>>, %arg6: memref<128x128xbf16, #tpu.memory_space<vmem>>, %arg7: memref<1x128xf32, #tpu.memory_space<vmem>>, %arg8: memref<1x128x128xbf16, #tpu.memory_space<vmem>>, %arg9: memref<1x128x128xbf16, #tpu.memory_space<vmem>>, %arg10: memref<1x128x128xbf16, #tpu.memory_space<vmem>>, %arg11: memref<1x128x128xbf16, #tpu.memory_space<vmem>>, %arg12: memref<64x128xbf16, #tpu.memory_space<vmem>>, %arg13: memref<64x128xbf16, #tpu.memory_space<vmem>>) attributes {dimension_semantics = [#tpu.dimension_semantics<parallel>, #tpu.dimension_semantics<arbitrary>], iteration_bounds = array<i64: 2, 4>, scalar_prefetch = 0 : i64, scratch_operands = 2 : i64, tpu.core_type = #tpu.core_type<tc>, window_params = [{transform_indices = @transform_0, window_bounds = array<i64: 1, 64, 128>}, {transform_indices = @transform_1, window_bounds = array<i64: 1, 64, 128>}, {pipeline_mode = #tpu.pipeline_mode<synchronous>, transform_indices = @transform_2, window_bounds = array<i64: 128, 128>}, {pipeline_mode = #tpu.pipeline_mode<synchronous>, transform_indices = @transform_3, window_bounds = array<i64: 1, 128>}, {pipeline_mode = #tpu.pipeline_mode<synchronous>, transform_indices = @transform_4, window_bounds = array<i64: 128, 128>}, {pipeline_mode = #tpu.pipeline_mode<synchronous>, transform_indices = @transform_5, window_bounds = array<i64: 1, 128>}, {transform_indices = @transform_6, window_bounds = array<i64: 1, 128, 128>}, {transform_indices = @transform_7, window_bounds = array<i64: 1, 128, 128>}, {transform_indices = @transform_8, window_bounds = array<i64: 1, 128, 128>}, {transform_indices = @transform_9, window_bounds = array<i64: 1, 128, 128>}]} {
    %c0 = arith.constant 0 : index
    %c0_0 = arith.constant 0 : index
    %c0_1 = arith.constant 0 : index
    %0 = vector.load %arg2[%c0, %c0_0, %c0_1] : memref<1x64x128xbf16, #tpu.memory_space<vmem>>, vector<1x64x128xbf16>
    %1 = vector.shape_cast %0 : vector<1x64x128xbf16> to vector<64x128xbf16>
    %c0_2 = arith.constant 0 : index
    %c0_3 = arith.constant 0 : index
    %2 = vector.load %arg4[%c0_2, %c0_3] : memref<128x128xbf16, #tpu.memory_space<vmem>>, vector<128x128xbf16>
    %cst = arith.constant dense<0.000000e+00> : vector<64x128xf32>
    %3 = tpu.matmul %1, %2, %cst {dimension_numbers = #tpu.dot_dimension_numbers<[1], [0], [0], [1], [0, 0, 1, 1], [], []>} : vector<64x128xbf16>, vector<128x128xbf16>, vector<64x128xf32> -> vector<64x128xf32>
    %c0_4 = arith.constant 0 : index
    %c0_5 = arith.constant 0 : index
    %4 = vector.load %arg5[%c0_4, %c0_5] : memref<1x128xf32, #tpu.memory_space<vmem>>, vector<1x128xf32>
    %5 = vector.broadcast %4 : vector<1x128xf32> to vector<64x128xf32>
    %6 = arith.addf %3, %5 : vector<64x128xf32>
    %7 = arith.truncf %6 : vector<64x128xf32> to vector<64x128xbf16>
    %c0_6 = arith.constant 0 : index
    %c0_7 = arith.constant 0 : index
    %c0_8 = arith.constant 0 : index
    %8 = vector.load %arg3[%c0_6, %c0_7, %c0_8] : memref<1x64x128xbf16, #tpu.memory_space<vmem>>, vector<1x64x128xbf16>
    %9 = vector.shape_cast %8 : vector<1x64x128xbf16> to vector<64x128xbf16>
    %c0_9 = arith.constant 0 : index
    %c0_10 = arith.constant 0 : index
    %10 = vector.load %arg6[%c0_9, %c0_10] : memref<128x128xbf16, #tpu.memory_space<vmem>>, vector<128x128xbf16>
    %cst_11 = arith.constant dense<0.000000e+00> : vector<64x128xf32>
    %11 = tpu.matmul %9, %10, %cst_11 {dimension_numbers = #tpu.dot_dimension_numbers<[1], [0], [0], [1], [0, 0, 1, 1], [], []>} : vector<64x128xbf16>, vector<128x128xbf16>, vector<64x128xf32> -> vector<64x128xf32>
    %c0_12 = arith.constant 0 : index
    %c0_13 = arith.constant 0 : index
    %12 = vector.load %arg7[%c0_12, %c0_13] : memref<1x128xf32, #tpu.memory_space<vmem>>, vector<1x128xf32>
    %13 = vector.broadcast %12 : vector<1x128xf32> to vector<64x128xf32>
    %14 = arith.addf %11, %13 : vector<64x128xf32>
    %15 = arith.truncf %14 : vector<64x128xf32> to vector<64x128xbf16>
    %c0_i32 = arith.constant 0 : i32
    %16 = arith.cmpi eq, %arg1, %c0_i32 : i32
    %17 = arith.extui %16 : i1 to i32
    %c0_i32_14 = arith.constant 0 : i32
    %18 = arith.cmpi ne, %17, %c0_i32_14 : i32
    scf.if %18 {
      %c0_18 = arith.constant 0 : index
      %c0_19 = arith.constant 0 : index
      %25 = vector.load %arg12[%c0_18, %c0_19] : memref<64x128xbf16, #tpu.memory_space<vmem>>, vector<64x128xbf16>
      tpu.vector_store %arg12[%c0_18, %c0_19], %7 {strides = array<i32>} : memref<64x128xbf16, #tpu.memory_space<vmem>>, vector<64x128xbf16>,
      %c0_20 = arith.constant 0 : index
      %c0_21 = arith.constant 0 : index
      %26 = vector.load %arg13[%c0_20, %c0_21] : memref<64x128xbf16, #tpu.memory_space<vmem>>, vector<64x128xbf16>
      tpu.vector_store %arg13[%c0_20, %c0_21], %15 {strides = array<i32>} : memref<64x128xbf16, #tpu.memory_space<vmem>>, vector<64x128xbf16>,
    } else {
    }
    %c0_i32_15 = arith.constant 0 : i32
    %19 = arith.cmpi sgt, %arg1, %c0_i32_15 : i32
    %20 = arith.extui %19 : i1 to i32
    %c0_i32_16 = arith.constant 0 : i32
    %21 = arith.cmpi ne, %20, %c0_i32_16 : i32
    scf.if %21 {
      %c0_18 = arith.constant 0 : index
      %c0_19 = arith.constant 0 : index
      %25 = vector.load %arg12[%c0_18, %c0_19] : memref<64x128xbf16, #tpu.memory_space<vmem>>, vector<64x128xbf16>
      %26 = arith.maximumf %25, %7 : vector<64x128xbf16>
      %c0_20 = arith.constant 0 : index
      %c0_21 = arith.constant 0 : index
      %27 = vector.load %arg12[%c0_20, %c0_21] : memref<64x128xbf16, #tpu.memory_space<vmem>>, vector<64x128xbf16>
      tpu.vector_store %arg12[%c0_20, %c0_21], %26 {strides = array<i32>} : memref<64x128xbf16, #tpu.memory_space<vmem>>, vector<64x128xbf16>,
      %c0_22 = arith.constant 0 : index
      %c0_23 = arith.constant 0 : index
      %28 = vector.load %arg13[%c0_22, %c0_23] : memref<64x128xbf16, #tpu.memory_space<vmem>>, vector<64x128xbf16>
      %29 = arith.maximumf %28, %15 : vector<64x128xbf16>
      %c0_24 = arith.constant 0 : index
      %c0_25 = arith.constant 0 : index
      %30 = vector.load %arg13[%c0_24, %c0_25] : memref<64x128xbf16, #tpu.memory_space<vmem>>, vector<64x128xbf16>
      tpu.vector_store %arg13[%c0_24, %c0_25], %29 {strides = array<i32>} : memref<64x128xbf16, #tpu.memory_space<vmem>>, vector<64x128xbf16>,
    } else {
    }
    %c3_i32 = arith.constant 3 : i32
    %22 = arith.cmpi eq, %arg1, %c3_i32 : i32
    %23 = arith.extui %22 : i1 to i32
    %c0_i32_17 = arith.constant 0 : i32
    %24 = arith.cmpi ne, %23, %c0_i32_17 : i32
    scf.if %24 {
      %25 = tpu.iota {dimensions = array<i32: 1>} : vector<64x128xi32>
      %c64_i32 = arith.constant 64 : i32
      %26 = vector.broadcast %c64_i32 : i32 to vector<64x128xi32>
      %27 = arith.cmpi slt, %25, %26 : vector<64x128xi32>
      %c0_18 = arith.constant 0 : index
      %c0_19 = arith.constant 0 : index
      %28 = vector.load %arg12[%c0_18, %c0_19] : memref<64x128xbf16, #tpu.memory_space<vmem>>, vector<64x128xbf16>
      %c0_20 = arith.constant 0 : index
      %c0_21 = arith.constant 0 : index
      %29 = vector.load %arg13[%c0_20, %c0_21] : memref<64x128xbf16, #tpu.memory_space<vmem>>, vector<64x128xbf16>
      %cst_22 = arith.constant 0.000000e+00 : bf16
      %30 = vector.broadcast %cst_22 : bf16 to vector<64x128xbf16>
      %31 = arith.select %27, %28, %30 : vector<64x128xi1>, vector<64x128xbf16>
      %cst_23 = arith.constant 0.000000e+00 : bf16
      %32 = vector.broadcast %cst_23 : bf16 to vector<64x128xbf16>
      %33 = tpu.concatenate %31, %32 in 0 : vector<64x128xbf16>, vector<64x128xbf16> -> vector<128x128xbf16>
      %c0_24 = arith.constant 0 : index
      %c0_25 = arith.constant 0 : index
      %c0_26 = arith.constant 0 : index
      %34 = vector.load %arg9[%c0_24, %c0_25, %c0_26] : memref<1x128x128xbf16, #tpu.memory_space<vmem>>, vector<1x128x128xbf16>
      %35 = vector.shape_cast %34 : vector<1x128x128xbf16> to vector<128x128xbf16>
      %36 = vector.shape_cast %33 : vector<128x128xbf16> to vector<1x128x128xbf16>
      tpu.vector_store %arg9[%c0_24, %c0_25, %c0_26], %36 {strides = array<i32>} : memref<1x128x128xbf16, #tpu.memory_space<vmem>>, vector<1x128x128xbf16>,
      %37 = arith.select %27, %30, %28 : vector<64x128xi1>, vector<64x128xbf16>
      %cst_27 = arith.constant 0.000000e+00 : bf16
      %38 = vector.broadcast %cst_27 : bf16 to vector<64x128xbf16>
      %39 = tpu.concatenate %37, %38 in 0 : vector<64x128xbf16>, vector<64x128xbf16> -> vector<128x128xbf16>
      %c0_28 = arith.constant 0 : index
      %c0_29 = arith.constant 0 : index
      %c0_30 = arith.constant 0 : index
      %40 = vector.load %arg8[%c0_28, %c0_29, %c0_30] : memref<1x128x128xbf16, #tpu.memory_space<vmem>>, vector<1x128x128xbf16>
      %41 = vector.shape_cast %40 : vector<1x128x128xbf16> to vector<128x128xbf16>
      %42 = vector.shape_cast %39 : vector<128x128xbf16> to vector<1x128x128xbf16>
      tpu.vector_store %arg8[%c0_28, %c0_29, %c0_30], %42 {strides = array<i32>} : memref<1x128x128xbf16, #tpu.memory_space<vmem>>, vector<1x128x128xbf16>,
      %43 = arith.select %27, %29, %30 : vector<64x128xi1>, vector<64x128xbf16>
      %cst_31 = arith.constant 0.000000e+00 : bf16
      %44 = vector.broadcast %cst_31 : bf16 to vector<64x128xbf16>
      %45 = tpu.concatenate %43, %44 in 0 : vector<64x128xbf16>, vector<64x128xbf16> -> vector<128x128xbf16>
      %c0_32 = arith.constant 0 : index
      %c0_33 = arith.constant 0 : index
      %c0_34 = arith.constant 0 : index
      %46 = vector.load %arg10[%c0_32, %c0_33, %c0_34] : memref<1x128x128xbf16, #tpu.memory_space<vmem>>, vector<1x128x128xbf16>
      %47 = vector.shape_cast %46 : vector<1x128x128xbf16> to vector<128x128xbf16>
      %48 = vector.shape_cast %45 : vector<128x128xbf16> to vector<1x128x128xbf16>
      tpu.vector_store %arg10[%c0_32, %c0_33, %c0_34], %48 {strides = array<i32>} : memref<1x128x128xbf16, #tpu.memory_space<vmem>>, vector<1x128x128xbf16>,
      %49 = arith.select %27, %30, %29 : vector<64x128xi1>, vector<64x128xbf16>
      %cst_35 = arith.constant 0.000000e+00 : bf16
      %50 = vector.broadcast %cst_35 : bf16 to vector<64x128xbf16>
      %51 = tpu.concatenate %49, %50 in 0 : vector<64x128xbf16>, vector<64x128xbf16> -> vector<128x128xbf16>
      %c0_36 = arith.constant 0 : index
      %c0_37 = arith.constant 0 : index
      %c0_38 = arith.constant 0 : index
      %52 = vector.load %arg11[%c0_36, %c0_37, %c0_38] : memref<1x128x128xbf16, #tpu.memory_space<vmem>>, vector<1x128x128xbf16>
      %53 = vector.shape_cast %52 : vector<1x128x128xbf16> to vector<128x128xbf16>
      %54 = vector.shape_cast %51 : vector<128x128xbf16> to vector<1x128x128xbf16>
      tpu.vector_store %arg11[%c0_36, %c0_37, %c0_38], %54 {strides = array<i32>} : memref<1x128x128xbf16, #tpu.memory_space<vmem>>, vector<1x128x128xbf16>,
    } else {
    }
    return
  }
  func.func @transform_0(%arg0: i32, %arg1: i32) -> (i32, i32, i32) {
    %c0_i32 = arith.constant 0 : i32
    %c0_i32_0 = arith.constant 0 : i32
    return %arg0, %arg1, %c0_i32 : i32, i32, i32
  }
  func.func @transform_1(%arg0: i32, %arg1: i32) -> (i32, i32, i32) {
    %c0_i32 = arith.constant 0 : i32
    %c0_i32_0 = arith.constant 0 : i32
    return %arg0, %arg1, %c0_i32 : i32, i32, i32
  }
  func.func @transform_2(%arg0: i32, %arg1: i32) -> (i32, i32) {
    %c0_i32 = arith.constant 0 : i32
    %c0_i32_0 = arith.constant 0 : i32
    %c0_i32_1 = arith.constant 0 : i32
    return %c0_i32, %c0_i32_0 : i32, i32
  }
  func.func @transform_3(%arg0: i32, %arg1: i32) -> (i32, i32) {
    %c0_i32 = arith.constant 0 : i32
    %c0_i32_0 = arith.constant 0 : i32
    %c0_i32_1 = arith.constant 0 : i32
    return %c0_i32, %c0_i32_0 : i32, i32
  }
  func.func @transform_4(%arg0: i32, %arg1: i32) -> (i32, i32) {
    %c0_i32 = arith.constant 0 : i32
    %c0_i32_0 = arith.constant 0 : i32
    %c0_i32_1 = arith.constant 0 : i32
    return %c0_i32, %c0_i32_0 : i32, i32
  }
  func.func @transform_5(%arg0: i32, %arg1: i32) -> (i32, i32) {
    %c0_i32 = arith.constant 0 : i32
    %c0_i32_0 = arith.constant 0 : i32
    %c0_i32_1 = arith.constant 0 : i32
    return %c0_i32, %c0_i32_0 : i32, i32
  }
  func.func @transform_6(%arg0: i32, %arg1: i32) -> (i32, i32, i32) {
    %c0_i32 = arith.constant 0 : i32
    %c0_i32_0 = arith.constant 0 : i32
    %c0_i32_1 = arith.constant 0 : i32
    return %arg0, %c0_i32, %c0_i32_0 : i32, i32, i32
  }
  func.func @transform_7(%arg0: i32, %arg1: i32) -> (i32, i32, i32) {
    %c0_i32 = arith.constant 0 : i32
    %c0_i32_0 = arith.constant 0 : i32
    %c0_i32_1 = arith.constant 0 : i32
    return %arg0, %c0_i32, %c0_i32_0 : i32, i32, i32
  }
  func.func @transform_8(%arg0: i32, %arg1: i32) -> (i32, i32, i32) {
    %c0_i32 = arith.constant 0 : i32
    %c0_i32_0 = arith.constant 0 : i32
    %c0_i32_1 = arith.constant 0 : i32
    return %arg0, %c0_i32, %c0_i32_0 : i32, i32, i32
  }
  func.func @transform_9(%arg0: i32, %arg1: i32) -> (i32, i32, i32) {
    %c0_i32 = arith.constant 0 : i32
    %c0_i32_0 = arith.constant 0 : i32
    %c0_i32_1 = arith.constant 0 : i32
    return %arg0, %c0_i32, %c0_i32_0 : i32, i32, i32
  }
}

</mosaic_0001>

<bundles_post_ra>
// kernel: tpu_custom_call.1
= control target key start
LH: loop header
LB: loop body
LE: loop exit
PB: predicated region body
PF: predicated region fallthrough
CT: control target
= control target key end

     0   :  { %s3108_s0 = inlined_call_operand.hbm [shape: bf16[2,256,128], index: 0, kind: input, shape index: {}]   ;;  %s3109_s1 = inlined_call_operand.hbm [shape: bf16[2,256,128], index: 1, kind: input, shape index: {}]   ;;  %s3110_s2 = inlined_call_operand.hbm [shape: bf16[128,128], index: 2, kind: input, shape index: {}]   ;;  %s3111_s3 = inlined_call_operand.vmem [shape: f32[1,128], index: 3, kind: input, shape index: {}]   ;;  %s3112_s4 = inlined_call_operand.hbm [shape: bf16[128,128], index: 4, kind: input, shape index: {}]   ;;  %s3113_s5 = inlined_call_operand.vmem [shape: f32[1,128], index: 5, kind: input, shape index: {}]   ;;  %s3114_s6 = inlined_call_operand.hbm [shape: bf16[2,128,128], index: 6, kind: output, shape index: {0}]   ;;  %s3115_s7 = inlined_call_operand.hbm [shape: bf16[2,128,128], index: 7, kind: output, shape index: {1}]   ;;  %s3116_s8 = inlined_call_operand.hbm [shape: bf16[2,128,128], index: 8, kind: output, shape index: {2}]   ;;  %s3117_s9 = inlined_call_operand.hbm [shape: bf16[2,128,128], index: 9, kind: output, shape index: {3}]  }
   0x1   :  { %3138 = sst [smem:[#allocation32_spill]] %s3108_s0 }
   0x2   :  { %3139 = sst [smem:[#allocation33_spill]] %s3109_s1 }
   0x3   :  { %3140 = sst [smem:[#allocation34_spill]] %s3110_s2 }
   0x4   :  { %3141 = sst [smem:[#allocation35_spill]] %s3111_s3 }
   0x5   :  { %3142 = sst [smem:[#allocation36_spill]] %s3112_s4 }
   0x6   :  { %3143 = sst [smem:[#allocation37_spill]] %s3113_s5 }
   0x7   :  { %3144 = sst [smem:[#allocation38_spill]] %s3114_s6 }
   0x8   :  { %3145 = sst [smem:[#allocation39_spill]] %s3115_s7 }
   0x9   :  { %3146 = sst [smem:[#allocation40_spill]] %s3116_s8 }
   0xa   :  { %3147 = sst [smem:[#allocation41_spill]] %s3117_s9 }
   0xb   :  { %15 = vsyncpa [#allocation5], 0 }
   0xc   :  { %17 = vsyncpa [#allocation5 + $0x1], 0 }
   0xd   :  { %18 = vsyncpa [#allocation8], 0 }
   0xe   :  { %20 = vsyncpa [#allocation8 + $0x1], 0 }
   0xf   :  { %21 = vsyncpa [#allocation11], 0 }
  0x10   :  { %22 = vsyncpa [#allocation6], 0 }
  0x11   :  { %24 = vsyncpa [#allocation6 + $0x1], 0 }
  0x12   :  { %25 = vsyncpa [#allocation14], 0 }
  0x13   :  { %27 = vsyncpa [#allocation14 + $0x1], 0 }
  0x14   :  { %28 = vsyncpa [#allocation17], 0 }
  0x15   :  { %30 = vsyncpa [#allocation17 + $0x1], 0  ;;  %s2459_s30 = smov 0   ;;  %s2461_s10 = smov 0  }
  0x16   :  { %s2463_s11 = smov 0   ;;  %s2465_s12 = smov 0  }
  0x17   :  { %s2467_s13 = smov 0   ;;  %s2469_s14 = smov 0  }
  0x18   :  { %s2471_s15 = smov 0   ;;  %s2473_s16 = smov 0  }
  0x19   :  { %s2475_s17 = smov 0   ;;  %s2477_s18 = smov 0  }
  0x1a   :  { %s2479_s19 = smov 0  }
  0x1b LB: > { %3148 = sst [smem:[#allocation25_spill]] %s2354_s30  ;;  %s2513_s20 = sadd.s32 4294967295, %s2394_s19   ;;  %s2394_s19 = sphi %s2479_s19, %s36_s19   ;;  %s2390_s18 = sphi %s2477_s18, %s3201_s18   ;;  %s2386_s17 = sphi %s2475_s17, %s3192_s17   ;;  %s2382_s16 = sphi %s2473_s16, %s3200_s16   ;;  %s2378_s15 = sphi %s2471_s15, %s3191_s15   ;;  %s2374_s14 = sphi %s2469_s14, %s3199_s14   ;;  %s2370_s13 = sphi %s2467_s13, %s3198_s13   ;;  %s2366_s12 = sphi %s2465_s12, %s3197_s12   ;;  %s2362_s11 = sphi %s2463_s11, %s3196_s11   ;;  %s2358_s10 = sphi %s2461_s10, %s3195_s10   ;;  %s2354_s30 = sphi %s2459_s30, %s3194_s30  }
  0x1c   : > { %3149 = sst [smem:[#allocation26_spill]] %s2378_s15  ;;  %s3118_s21 = sadd.s32 4294967294, %s2394_s19  }
  0x1d   : > { %3150 = sst [smem:[#allocation27_spill]] %s2382_s16  ;;  %p70_p0 = scmp.ne.s32.totalorder %s2370_s13, %s2366_s12 }
  0x1e   : > { %3151 = sst [smem:[#allocation28_spill]] %s2386_s17  ;;  %p3133_p1 = scmp.eq.s32.totalorder %s2513_s20, 0 }
  0x1f   : > { %p205_p2 = scmp.ne.s32.totalorder %s2362_s11, %s2358_s10  ;;  %p206_p4 = scmp.eq.s32.totalorder %s2513_s20, 7 }
  0x20   : > { %p2523_p3 = por %p3133_p1, %p70_p0  ;;  %p211_p5 = scmp.ne.s32.totalorder %s2358_s10, %s2354_s30 }
  0x21   : > { %p212_p6 = scmp.eq.s32.totalorder %s3118_s21, 7  ;;  %p2532_p7 = por %p206_p4, %p205_p2 }
  0x22   : > { %p1558_p8 = scmp.ge.s32.totalorder %s2394_s19, 1  ;;  %p297_p10 = scmp.lt.s32.totalorder %s2394_s19, 9 }
  0x23   : > { %s3153_s24 = scalar_select %p2532_p7, 1, 0 }
  0x24   : > { %p2537_p9 = por %p212_p6, %p211_p5  ;;  %p2542_p11 = pnand %p1558_p8, %p297_p10 }
  0x25   : > { %3154 = sst [smem:[#allocation29_spill]] %s3153_s24  ;;  %s2396_s27 = smov [#allocation9]  }
  0x26   : > { %s3155_s25 = scalar_select %p2537_p9, 1, 0 }
  0x27   : > { %s309_s28 = sshll.u32 %s2396_s27, 4  ;;  %p1916_p12 = pneg %p2542_p11  ;;  %s310_s28 = int_to_ptr.vmem [resolvable:$true] %s309_s28 }
  0x28   : > { %3156 = sst [smem:[#allocation30_spill]] %s3155_s25  ;;  %s2397_s12 = smov [#allocation10]  }
  0x29   : > { %p2550_p13 = pnand %p1916_p12, %p3133_p1  ;;  %s325_s21 = sshll.u32 %s2397_s12, 4  ;;  %s326_s21 = int_to_ptr.vmem [resolvable:$true] %s325_s21 }
  0x2a   : > { %s2079_s22 = scalar_lea.vmem %s310_s28, 1024  ;;  %p2087_p6 = scmp.lt.s32.totalorder %s310_s28, %s310_s28 }
  0x2b   : > { %p2070_p0 = pneg %p2550_p13  ;;  %p2080_p2 = scmp.ne.s32.totalorder %s310_s28, %s2079_s22 }
  0x2c   : > { %p2088_p8 = scmp.lt.s32.totalorder %s2079_s22, %s2079_s22 }
  0x2d   : > { %p2082_p4 = pnand %p2080_p2, %p2070_p0 }
  0x2e   : > { %p2089_p10 = por %p2088_p8, %p2087_p6 }
  0x2f   : > { %p2083_p5 = pneg %p2082_p4 }
  0x31   : > { %p2090_p12 = pnand %p2089_p10, %p2083_p5 }
  0x33   : > { %2093 = shalt.err (!%p2090_p12)
}
  0x34   : > { %s3123_s27 = smov 64   ;;  %s3125_s25 = smov 4  }
  0x35   : > { %s3159_s2 = sld [smem:[#allocation34_spill]]  ;;  %s2105_s9 = scalar_lea.vmem %s326_s21, 1024 }
  0x36   : > { %p2106_p2 = scmp.ne.s32.totalorder %s326_s21, %s2105_s9  ;;  %p2113_p5 = scmp.lt.s32.totalorder %s326_s21, %s326_s21 }
  0x37   : > { %p2114_p8 = scmp.lt.s32.totalorder %s2105_s9, %s2105_s9 }
  0x38   : > { %p2108_p4 = pnand %p2106_p2, %p2070_p0 }
  0x39   : > { %p2115_p10 = por %p2114_p8, %p2113_p5 }
  0x3a   : > { %p2109_p6 = pneg %p2108_p4 }
  0x3b   : > { %1919 = dma.hbm_to_vmem [thread:$0]  (!%p2550_p13), %s3159_s2, 1024, %s310_s28, [#allocation8], %s3123_s27, %s3123_s27, %s3125_s25  }
  0x3c   : > { %p2116_p12 = pnand %p2115_p10, %p2109_p6 }
  0x3e   : > { %2119 = shalt.err (!%p2116_p12)
}
  0x3f   : > { %s3160_s4 = sld [smem:[#allocation36_spill]]  ;;  %s45_s9 = sadd.s32 1, %s2386_s17 }
  0x40   : > { %s48_s30 = sadd.s32 1, %s2390_s18  ;;  %p46_p0 = scmp.ge.s32.totalorder %s45_s9, 4 }
  0x41   : > { %s57_s28 = sadd.s32 1, %s2374_s14  ;;  %p64_p2 = scmp.ne.s32.totalorder %s2374_s14, %s2370_s13 }
  0x42   : > { %p65_p4 = scmp.eq.s32.totalorder %s2394_s19, 0  ;;  %s3203_s9 = smov (%p46_p0, %s45_s9), 0 }
  0x43   : > { %3161 = sst [smem:[#allocation31_spill]] %s3203_s9  ;;  %s3205_s30 = smov (!%p46_p0, %s48_s30), %s2390_s18 }
  0x44   : > { %s53_s8 = ssub.s32 %s2386_s17, %s3203_s9  ;;  %p2589_p6 = por %p65_p4, %p64_p2 }
  0x45   : > { %1922 = dma.hbm_to_vmem [thread:$0]  (!%p2550_p13), %s3160_s4, 1024, %s326_s21, [#allocation11], %s3123_s27, %s3123_s27, %s3125_s25  }
  0x46   : > { %p50_p13 = scmp.ge.s32.totalorder %s3205_s30, 2  ;;  %p1945_p5 = scmp.lt.s32.totalorder %s2394_s19, 8 }
  0x47   : > { %s342_s21 = sand.u32 1, %s2374_s14   ;;  %s1563_s12 = sshll.u32 %s2386_s17, 3 }
  0x48   : > { %s3207_s30 = smov (%p50_p13, %s3205_s30), 0  ;;  %s1562_s22 = sshll.u32 %s342_s21, 5 }
  0x49   : > { %s52_s27 = ssub.s32 %s2390_s18, %s3207_s30  ;;  %s1564_s2 = sshll.u32 %s2390_s18, 5 }
  0x4a   : > { %s54_s25 = sor.u32 %s53_s8, %s52_s27  ;;  %p193_p8 = scmp.eq.s32.totalorder %s52_s27, 0 }
  0x4b   : > { %p55_p10 = scmp.eq.s32.totalorder %s54_s25, 0  ;;  %s3163_s4 = sadd.s32 1, %s2362_s11 }
  0x4c   : > { %s2604_s9 = scalar_select %p193_p8, %s2362_s11, %s3163_s4  }
  0x4d   : > { %s2607_s6 = scalar_select %p55_p10, %s2374_s14, %s57_s28  }
  0x4e   : > { %s352_s7 = sadd.s32 %s1564_s2, %s1563_s12  ;;  %s346_s24 = scalar_lea.vmem [#allocation4], %s1562_s22 }
  0x4f   : > { %s355_s16 = sshll.u32 %s346_s24, 4  ;;  %s1565_s17 = sshll.u32 %s352_s7, 6  ;;  %s356_s16 = int_to_ptr.vmem [resolvable:$true] %s355_s16 }
  0x50   : > { %s3164_s0 = sld [smem:[#allocation32_spill]]  ;;  %p2616_p12 = pnand %p1945_p5, %p2589_p6 }
  0x51   : > { %s3166_s1 = sld [smem:[#allocation33_spill]]  ;;  %s369_s24 = scalar_lea.vmem [#allocation7], %s1562_s22 }
  0x52   : > { %s378_s7 = sshll.u32 %s369_s24, 4  ;;  %s343_s28 = scalar_lea.sflag [#allocation5], %s342_s21  ;;  %s379_s7 = int_to_ptr.vmem [resolvable:$true] %s378_s7 }
  0x53   : > { %p2122_p0 = pneg %p2616_p12  ;;  %s2133_s5 = scalar_lea.vmem %s356_s16, 512 }
  0x54   : > { %p2134_p2 = scmp.ne.s32.totalorder %s356_s16, %s2133_s5  ;;  %s2400_s15 = smov [#allocation4]  }
  0x55   : > { %s2138_s8 = sshll.u32 %s2400_s15, 4  ;;  %s2139_s8 = int_to_ptr.vmem [resolvable:$false] %s2138_s8 }
  0x56   : > { %s354_s3 = scalar_lea.hbm %s3164_s0, %s1565_s17  ;;  %p2136_p4 = pnand %p2134_p2, %p2122_p0 }
  0x57   : > { %s2623_s2 = scalar_lea.hbm %s3166_s1, %s1565_s17  ;;  %s2140_s29 = scalar_lea.vmem %s2139_s8, 1024 }
  0x58   : > { %p2137_p6 = pneg %p2136_p4  ;;  %p2141_p13 = scmp.lt.s32.totalorder %s356_s16, %s2139_s8 }
  0x59   : > { %p2142_p5 = scmp.lt.s32.totalorder %s2140_s29, %s2133_s5 }
  0x5b   : > { %p2143_p8 = por %p2142_p5, %p2141_p13 }
  0x5d   : > { %p2144_p10 = pnand %p2143_p8, %p2137_p6 }
  0x5f   : > { %2147 = shalt.err (!%p2144_p10)
}
  0x60   : > { %s3167_s17 = smov 4   ;;  %s3168_s21 = smov 64  }
  0x61   : > { %1926 = dma.hbm_to_vmem [thread:$0]  (!%p2616_p12), %s354_s3, 512, %s356_s16, %s343_s28, %s3168_s21, %s3168_s21, %s3167_s17  }
  0x62   : > { %s365_s12 = sand.u32 1, %s2394_s19   ;;  %s2161_s25 = scalar_lea.vmem %s379_s7, 512 }
  0x63   : > { %s366_s22 = scalar_lea.sflag [#allocation8], %s365_s12  ;;  %p2162_p2 = scmp.ne.s32.totalorder %s379_s7, %s2161_s25 }
  0x64   : > { %s2401_s4 = smov [#allocation7]  }
  0x65   : > { %p2164_p4 = pnand %p2162_p2, %p2122_p0  ;;  %s2166_s24 = sshll.u32 %s2401_s4, 4  ;;  %s2167_s24 = int_to_ptr.vmem [resolvable:$false] %s2166_s24 }
  0x66   : > { %s2168_s5 = scalar_lea.vmem %s2167_s24, 1024  ;;  %p2169_p6 = scmp.lt.s32.totalorder %s379_s7, %s2167_s24 }
  0x67   : > { %p2165_p1 = pneg %p2164_p4  ;;  %p2170_p13 = scmp.lt.s32.totalorder %s2168_s5, %s2161_s25 }
  0x69   : > { %p2171_p5 = por %p2170_p13, %p2169_p6 }
  0x6b   : > { %p2172_p8 = pnand %p2171_p5, %p2165_p1 }
  0x6d   : > { %2175 = shalt.err (!%p2172_p8)
}
  0x6e   : > { %1929 = dma.hbm_to_vmem [thread:$0]  (!%p2616_p12), %s2623_s2, 512, %s379_s7, %s366_s22, %s3168_s21, %s3168_s21, %s3167_s17  }
  0x6f   : > { %390 = sbr.rel (%p2542_p11) target bundleno = 547 (0x223), region = 44  ;;  %s392_s3 = sand.u32 (!%p2542_p11), 1, %s2370_s13  }
  0x70   : > { %s1571_s16 = sshll.u32 (!%p2542_p11), %s392_s3, 5  ;;  %s393_s28 = scalar_lea.sflag (!%p2542_p11), [#allocation5], %s392_s3 }
  0x71   : > { %s2648_s15 = scalar_lea.vmem (!%p2542_p11), [#allocation4], %s1571_s16 }
  0x74   : > { %2325 = dma.done.wait (%p2523_p3), %s393_s28, 512  }
  0x75   : > { %2327 = vsyncadd (%p2523_p3), %s393_s28, 4294966784  ;;  %s401_s27 = sand.u32 1, %s2513_s20   ;;  %s2657_s26 = scalar_lea.vmem [#allocation7], %s1571_s16 }
  0x76   : > { %s402_s2 = scalar_lea.sflag [#allocation8], %s401_s27 }
  0x77   : > { %2329 = dma.done.wait (%p2523_p3), %s402_s2, 512  }
  0x78   : > { %2331 = vsyncadd (%p2523_p3), %s402_s2, 4294966784  ;;  %p3169_p1 = scmp.eq.s32.totalorder %s2513_s20, 0 }
  0x7a   : > { %2333 = dma.done.wait (%p3169_p1), [#allocation8], 1024   ;;  %p3170_p11 = pmov %p3169_p1 }
  0x7b   : > { %p3171_p12 = pmov %p3169_p1 }
  0x7c   : > { %2335 = vsyncadd (%p3170_p11), [#allocation8], 4294966272 }
  0x7d   : > { %2337 = dma.done.wait (%p3171_p12), [#allocation11], 1024   ;;  %p3172_p0 = pmov %p3169_p1 }
  0x7e   : > { %s2672_s7 = sand.u32 1, %s2358_s10   ;;  %v2044_v0 = vld [vmem:[#allocation9 + $0x38] sm:$0xff]   ;;  %v2046_v2 = vld [vmem:[#allocation9 + $0x30] sm:$0xff]   ;;  %v2048_v4 = vld [vmem:[#allocation9 + $0x28] sm:$0xff]   ;;  %s3173_s17 = sld [smem:[#allocation35_spill]] }
  0x7f   : > { %2339 = vsyncadd (%p3172_p0), [#allocation11], 4294966272  ;;  %s2675_s8 = sshll.u32 %s2672_s7, 6  ;;  %v2045_v1 = vld [vmem:[#allocation10 + $0x38] sm:$0xff]   ;;  %1848 = vmatprep.subr.bf16.mxu0 %v2044_v0  ;;  %v2047_v3 = vld [vmem:[#allocation10 + $0x30] sm:$0xff]   ;;  %s3174_s22 = sld [smem:[#allocation37_spill]] }
  0x80   : > { %1872 = vmatprep.subr.bf16.mxu1 %v2045_v1  ;;  %1849 = vmatpush3.bf16.msra.mxu0 %v2044_v0  ;;  %v2049_v5 = vld [vmem:[#allocation10 + $0x28] sm:$0xff]   ;;  %v2050_v6 = vld [vmem:[#allocation9 + $0x20] sm:$0xff]   ;;  %v2052_v8 = vld [vmem:[#allocation9 + $0x18] sm:$0xff]   ;;  %s2716_s25 = scalar_lea.vmem [#allocation12], %s2675_s8  ;;  %s2719_s4 = scalar_lea.vmem [#allocation13], %s2675_s8 }
  0x81   : > { %1873 = vmatpush3.bf16.msra.mxu1 %v2045_v1  ;;  %1850 = vmatprep.subr.bf16.mxu0 %v2046_v2  ;;  %v2051_v7 = vld [vmem:[#allocation10 + $0x20] sm:$0xff]   ;;  %v2053_v9 = vld [vmem:[#allocation10 + $0x18] sm:$0xff]   ;;  %v2054_v10 = vld [vmem:[#allocation9 + $0x10] sm:$0xff]   ;;  %s2722_s24 = scalar_lea.vmem [#allocation15], %s2675_s8  ;;  %s2725_s5 = scalar_lea.vmem [#allocation16], %s2675_s8 }
  0x82   : > { %1874 = vmatprep.subr.bf16.mxu1 %v2047_v3  ;;  %v2055_v11 = vld [vmem:[#allocation10 + $0x10] sm:$0xff]   ;;  %v2060_v12 = vld [vmem:[%s2648_s15] sm:$0xff]   ;;  %v2056_v14 = vld [vmem:[#allocation9 + $0x8] sm:$0xff]   ;;  %s3175_s3 = sld [smem:[#allocation26_spill]] }
  0x83   : > { %v2061_v13 = vld [vmem:[%s2657_s26] sm:$0xff]   ;;  %1864 = vmatprep.mubr.bf16.mxu0 %v2060_v12  ;;  %v2057_v15 = vld [vmem:[#allocation10 + $0x8] sm:$0xff]   ;;  %v2064_v20 = vld [vmem:[%s2648_s15 + $0x10] sm:$0xff]  }
  0x84   : > { %1851 = vmatpush3.bf16.msra.mxu0 %v2046_v2  ;;  %1888 = vmatprep.mubr.bf16.mxu1 %v2061_v13  ;;  %v2058_v16 = vld [vmem:[#allocation9] sm:$0xff]   ;;  %v2062_v18 = vld [vmem:[%s2648_s15 + $0x8] sm:$0xff]   ;;  %v2065_v21 = vld [vmem:[%s2657_s26 + $0x10] sm:$0xff]  }
  0x85   : > { %1875 = vmatpush3.bf16.msra.mxu1 %v2047_v3  ;;  %1852 = vmatprep.subr.bf16.mxu0 %v2048_v4  ;;  %v2059_v17 = vld [vmem:[#allocation10] sm:$0xff]   ;;  %v2063_v19 = vld [vmem:[%s2657_s26 + $0x8] sm:$0xff]   ;;  %v2066_v22 = vld [vmem:[%s2648_s15 + $0x18] sm:$0xff]  }
  0x86   : > { %1876 = vmatprep.subr.bf16.mxu1 %v2049_v5  ;;  %v2067_v23 = vld [vmem:[%s2657_s26 + $0x18] sm:$0xff]   ;;  %v1579_v24 = vld [vmem:[%s3173_s17] ss:$0 sm:$0xff] }
  0x87   : > { %v1592_v25 = vld [vmem:[%s3174_s22] ss:$0 sm:$0xff] }
  0x88   : > { %1853 = vmatpush3.bf16.msra.mxu0 %v2048_v4  ;;  %p1605_p3 = scmp.ne.s32.totalorder %s3175_s3, 0 }
  0x89   : > { %1877 = vmatpush3.bf16.msra.mxu1 %v2049_v5  ;;  %1854 = vmatprep.subr.bf16.mxu0 %v2050_v6 }
  0x8a   : > { %1878 = vmatprep.subr.bf16.mxu1 %v2051_v7 }
  0x8c   : > { %1855 = vmatpush3.bf16.msra.mxu0 %v2050_v6 }
  0x8d   : > { %1879 = vmatpush3.bf16.msra.mxu1 %v2051_v7  ;;  %1856 = vmatprep.subr.bf16.mxu0 %v2052_v8 }
  0x8e   : > { %1880 = vmatprep.subr.bf16.mxu1 %v2053_v9 }
  0x90   : > { %1857 = vmatpush3.bf16.msra.mxu0 %v2052_v8 }
  0x91   : > { %1881 = vmatpush3.bf16.msra.mxu1 %v2053_v9  ;;  %1858 = vmatprep.subr.bf16.mxu0 %v2054_v10 }
  0x92   : > { %1882 = vmatprep.subr.bf16.mxu1 %v2055_v11 }
  0x94   : > { %1859 = vmatpush3.bf16.msra.mxu0 %v2054_v10 }
  0x95   : > { %1883 = vmatpush3.bf16.msra.mxu1 %v2055_v11  ;;  %1860 = vmatprep.subr.bf16.mxu0 %v2056_v14 }
  0x96   : > { %1884 = vmatprep.subr.bf16.mxu1 %v2057_v15 }
  0x98   : > { %1861 = vmatpush3.bf16.msra.mxu0 %v2056_v14 }
  0x99   : > { %1885 = vmatpush3.bf16.msra.mxu1 %v2057_v15  ;;  %1862 = vmatprep.subr.bf16.mxu0 %v2058_v16 }
  0x9a   : > { %1886 = vmatprep.subr.bf16.mxu1 %v2059_v17 }
  0x9c   : > { %1863 = vmatpush3.bf16.msra.mxu0 %v2058_v16 }
  0x9d   : > { %1887 = vmatpush3.bf16.msra.mxu1 %v2059_v17 }
  0x9f   : > { %1865 = vmatmul.mubr.bf16.vlgmr.msra.gmra.mxu0 %v2062_v18 }
  0xa0   : > { %1889 = vmatmul.mubr.bf16.vlgmr.msra.gmra.mxu1 %v2063_v19  ;;  %1868 = vmatprep.mubr.bf16.mxu0 %v2064_v20 }
  0xa1   : > { %1892 = vmatprep.mubr.bf16.mxu1 %v2065_v21 }
  0xa7   : > { %1869 = vmatmul.mubr.bf16.gmra.mxu0 %v2066_v22 }
  0xa8   : > { %1893 = vmatmul.mubr.bf16.gmra.mxu1 %v2067_v23 }
 0x15f   : > { %v1866_v26 = vpop.f32.mrf.mxu0 }
 0x160   : > { %v2691_v27 = vadd.f32 %v1866_v26, %v1579_v24  ;;  %v1890_v28 = vpop.f32.mrf.mxu1 }
 0x161   : > { %v2693_v29 = vadd.f32 %v1890_v28, %v1592_v25  ;;  %v608_v30 = vpop.f32.mrf.mxu0 }
 0x162   : > { %v2695_v31 = vadd.f32 %v1579_v24, %v608_v30  ;;  %v780_v32 = vpop.f32.mrf.mxu1 }
 0x163   : > { %v2697_v33 = vadd.f32 %v1592_v25, %v780_v32  ;;  %v1867_v34 = vpop.f32.mrf.mxu0 }
 0x164   : > { %v2699_v35 = vadd.f32 %v1867_v34, %v1579_v24  ;;  %v1891_v36 = vpop.f32.mrf.mxu1 }
 0x165   : > { %v2701_v37 = vadd.f32 %v1891_v36, %v1592_v25  ;;  %v611_v38 = vpop.f32.mrf.mxu0 }
 0x166   : > { %v612_v39 = vadd.f32 %v1579_v24, %v611_v38  ;;  %v783_v40 = vpop.f32.mrf.mxu1 }
 0x167   : > { %v2703_v41 = vadd.f32 %v1592_v25, %v783_v40  ;;  %v1870_v42 = vpop.f32.mrf.mxu0 }
 0x168   : > { %v2705_v43 = vadd.f32 %v1870_v42, %v1579_v24  ;;  %v1894_v44 = vpop.f32.mrf.mxu1 }
 0x169   : > { %v2707_v45 = vadd.f32 %v1894_v44, %v1592_v25  ;;  %v624_v46 = vpop.f32.mrf.mxu0 }
 0x16a   : > { %v625_v47 = vadd.f32 %v1579_v24, %v624_v46  ;;  %v796_v48 = vpop.f32.mrf.mxu1 }
 0x16b   : > { %v2709_v49 = vadd.f32 %v1592_v25, %v796_v48  ;;  %v1871_v50 = vpop.f32.mrf.mxu0  ;;  %818 = sbr.rel (%p1605_p3) target bundleno = 374 (0x176), region = 64 }
 0x16c   : > { %v636_v51 = vadd.f32 %v1871_v50, %v1579_v24  ;;  %v1895_v52 = vpop.f32.mrf.mxu1 }
 0x16d   : > { %v2711_v53 = vadd.f32 %v1895_v52, %v1592_v25  ;;  %v627_v54 = vpop.f32.mrf.mxu0 }
 0x16e   : > { %v628_v55 = vadd.f32 %v1579_v24, %v627_v54  ;;  %v799_v56 = vpop.f32.mrf.mxu1 }
 0x16f   : > { %v2713_v57 = vadd.f32 %v1592_v25, %v799_v56 }
 0x170   : > { %v1727_v58 = vpack.c.bf16 %v612_v39, %v2695_v31  ;;  %v1732_v59 = vpack.c.bf16 %v2699_v35, %v2691_v27  ;;  %v1737_v60 = vpack.c.bf16 %v628_v55, %v625_v47  ;;  %v1742_v61 = vpack.c.bf16 %v636_v51, %v2705_v43 }
 0x171   : > { %v1747_v62 = vpack.c.bf16 %v2703_v41, %v2697_v33  ;;  %v1752_v63 = vpack.c.bf16 %v2701_v37, %v2693_v29  ;;  %v1757_v0 = vpack.c.bf16 %v2713_v57, %v2709_v49  ;;  %v1762_v1 = vpack.c.bf16 %v2711_v53, %v2707_v45 }
 0x172   : > { %1728 = vst [vmem:[#allocation2] sm:$0xff] %v1727_v58   ;;  %1804 = vst [vmem:[#allocation2 + $0x8] sm:$0xff] %v1732_v59  }
 0x173   : > { %1805 = vst [vmem:[#allocation2 + $0x10] sm:$0xff] %v1737_v60   ;;  %1806 = vst [vmem:[#allocation2 + $0x18] sm:$0xff] %v1742_v61  }
 0x174   : > { %1748 = vst [vmem:[#allocation3] sm:$0xff] %v1747_v62   ;;  %1807 = vst [vmem:[#allocation3 + $0x8] sm:$0xff] %v1752_v63  }
 0x175   : > { %1808 = vst [vmem:[#allocation3 + $0x10] sm:$0xff] %v1757_v0   ;;  %1809 = vst [vmem:[#allocation3 + $0x18] sm:$0xff] %v1762_v1  }
 0x176 PF: > { %s3176_s16 = sld [smem:[#allocation26_spill]] }
 0x17c   : > { %p1622_p10 = scmp.le.s32.totalorder %s3176_s16, 0 }
 0x17e   : > { %894 = sbr.rel (%p1622_p10) target bundleno = 402 (0x192), region = 68 }
 0x183   : > { %v895_v2 = vld [vmem:[#allocation2] sm:$0xf]  ;;  %v896_v3 = vld [vmem:[#allocation2 + $0x4] sm:$0xf]  ;;  %v1704_v4 = vpack.c.bf16 %v2695_v31, %v2695_v31  ;;  %v1705_v5 = vpack.c.bf16 %v612_v39, %v612_v39  ;;  %v897_v6 = vld [vmem:[#allocation2 + $0x8] sm:$0xf]  ;;  %v1706_v7 = vpack.c.bf16 %v2691_v27, %v2691_v27  ;;  %v1707_v8 = vpack.c.bf16 %v2699_v35, %v2699_v35 }
 0x184   : > { %v898_v9 = vld [vmem:[#allocation2 + $0xc] sm:$0xf]  ;;  %v899_v10 = vld [vmem:[#allocation2 + $0x10] sm:$0xf]  ;;  %v900_v11 = vld [vmem:[#allocation2 + $0x14] sm:$0xf]  ;;  %v1708_v12 = vpack.c.bf16 %v625_v47, %v625_v47  ;;  %v1709_v13 = vpack.c.bf16 %v628_v55, %v628_v55  ;;  %v1710_v14 = vpack.c.bf16 %v2705_v43, %v2705_v43  ;;  %v1711_v15 = vpack.c.bf16 %v636_v51, %v636_v51 }
 0x185   : > { %v931_v16 = vmax.bf16 %v1704_v4, %v895_v2  ;;  %v932_v17 = vmax.bf16 %v1705_v5, %v896_v3  ;;  %v933_v18 = vmax.bf16 %v1706_v7, %v897_v6  ;;  %v934_v19 = vmax.bf16 %v1707_v8, %v898_v9  ;;  %v901_v20 = vld [vmem:[#allocation2 + $0x18] sm:$0xf]  ;;  %v902_v21 = vld [vmem:[#allocation2 + $0x1c] sm:$0xf]  ;;  %v947_v26 = vld [vmem:[#allocation3] sm:$0xf] }
 0x186   : > { %v935_v22 = vmax.bf16 %v1708_v12, %v899_v10  ;;  %v936_v23 = vmax.bf16 %v1709_v13, %v900_v11  ;;  %v937_v24 = vmax.bf16 %v1710_v14, %v901_v20  ;;  %v938_v25 = vmax.bf16 %v1711_v15, %v902_v21  ;;  %v948_v27 = vld [vmem:[#allocation3 + $0x4] sm:$0xf]  ;;  %v949_v34 = vld [vmem:[#allocation3 + $0x8] sm:$0xf]  ;;  %v950_v35 = vld [vmem:[#allocation3 + $0xc] sm:$0xf] }
 0x187   : > { %v1810_v28 = vcombine.low %v931_v16, %v932_v17  ;;  %v1811_v30 = vcombine.low %v933_v18, %v934_v19  ;;  %v1712_v31 = vpack.c.bf16 %v2697_v33, %v2697_v33  ;;  %v1713_v32 = vpack.c.bf16 %v2703_v41, %v2703_v41  ;;  %v951_v42 = vld [vmem:[#allocation3 + $0x10] sm:$0xf]  ;;  %v952_v43 = vld [vmem:[#allocation3 + $0x14] sm:$0xf]  ;;  %v953_v47 = vld [vmem:[#allocation3 + $0x18] sm:$0xf] }
 0x188   : > { %v1813_v36 = vcombine.low %v935_v22, %v936_v23  ;;  %v1815_v38 = vcombine.low %v937_v24, %v938_v25  ;;  %v1714_v39 = vpack.c.bf16 %v2693_v29, %v2693_v29  ;;  %v1715_v40 = vpack.c.bf16 %v2701_v37, %v2701_v37  ;;  %v954_v48 = vld [vmem:[#allocation3 + $0x1c] sm:$0xf] }
 0x189   : > { %1768 = vst [vmem:[#allocation2] sm:$0xff] %v1810_v28   ;;  %1812 = vst [vmem:[#allocation2 + $0x8] sm:$0xff] %v1811_v30   ;;  %v983_v44 = vmax.bf16 %v1712_v31, %v947_v26  ;;  %v984_v46 = vmax.bf16 %v1713_v32, %v948_v27  ;;  %v1716_v33 = vpack.c.bf16 %v2709_v49, %v2709_v49 }
 0x18a   : > { %v1717_v41 = vpack.c.bf16 %v2713_v57, %v2713_v57  ;;  %1814 = vst [vmem:[#allocation2 + $0x10] sm:$0xff] %v1813_v36   ;;  %1816 = vst [vmem:[#allocation2 + $0x18] sm:$0xff] %v1815_v38   ;;  %v985_v29 = vmax.bf16 %v1714_v39, %v949_v34  ;;  %v986_v50 = vmax.bf16 %v1715_v40, %v950_v35 }
 0x18b   : > { %v1718_v37 = vpack.c.bf16 %v2707_v45, %v2707_v45  ;;  %v1719_v51 = vpack.c.bf16 %v2711_v53, %v2711_v53  ;;  %v1817_v52 = vcombine.low %v983_v44, %v984_v46  ;;  %v987_v54 = vmax.bf16 %v1716_v33, %v951_v42 }
 0x18c   : > { %v988_v55 = vmax.bf16 %v1717_v41, %v952_v43  ;;  %v1818_v56 = vcombine.low %v985_v29, %v986_v50 }
 0x18d   : > { %v989_v49 = vmax.bf16 %v1718_v37, %v953_v47  ;;  %v990_v58 = vmax.bf16 %v1719_v51, %v954_v48  ;;  %1788 = vst [vmem:[#allocation3] sm:$0xff] %v1817_v52  }
 0x18e   : > { %v1820_v57 = vcombine.low %v987_v54, %v988_v55  ;;  %1819 = vst [vmem:[#allocation3 + $0x8] sm:$0xff] %v1818_v56  }
 0x18f   : > { %v1822_v59 = vcombine.low %v989_v49, %v990_v58 }
 0x190   : > { %1821 = vst [vmem:[#allocation3 + $0x10] sm:$0xff] %v1820_v57  }
 0x191   : > { %1823 = vst [vmem:[#allocation3 + $0x18] sm:$0xff] %v1822_v59  }
 0x192 PF: > { %s3177_s28 = sld [smem:[#allocation26_spill]] }
 0x198   : > { %p1639_p2 = scmp.ne.s32.totalorder %s3177_s28, 3 }
 0x19a   : > { %1002 = sbr.rel (%p1639_p2) target bundleno = 452 (0x1c4), region = 72 }
 0x19f   : > { %v1003_v45 = vlaneseq  ;;  %v2766_v60 = vld [vmem:[#allocation2] sm:$0xf]  ;;  %v2768_v61 = vld [vmem:[#allocation2 + $0x4] sm:$0xf]  ;;  %v2770_v62 = vld [vmem:[#allocation2 + $0x8] sm:$0xf] }
 0x1a0   : > { %v2772_v63 = vld [vmem:[#allocation2 + $0xc] sm:$0xf]  ;;  %v2402_v0 = vmov 0   ;;  %v2774_v3 = vld [vmem:[#allocation2 + $0x10] sm:$0xf] }
 0x1a1   : > { %v1004_v53 = vand.u32 127, %v1003_v45  ;;  %v1648_v1 = vcombine.low %v2402_v0, %v2402_v0  ;;  %v1649_v2 = vcombine.high %v2402_v0, %v2402_v0  ;;  %v2776_v4 = vld [vmem:[#allocation2 + $0x14] sm:$0xf]  ;;  %v2782_v6 = vld [vmem:[#allocation2 + $0x18] sm:$0xf] }
 0x1a2   : > { %v2784_v7 = vld [vmem:[#allocation2 + $0x1c] sm:$0xf]  ;;  %v1014_v28 = vld [vmem:[#allocation3] sm:$0xf]  ;;  %v1015_v35 = vld [vmem:[#allocation3 + $0x4] sm:$0xf] }
 0x1a3   : > { %vm1005_vm0 = vcmp.lt.s32.totalorder %v1004_v53, 64  ;;  %1078 = vst [vmem:[%s2719_s4 + $0x20] sm:$0xf] %v1648_v1  ;;  %1080 = vst [vmem:[%s2719_s4 + $0x28] sm:$0xf] %v1648_v1 }
 0x1a4   : > { %vm2778_vm1 = vmpackc.low %vm1005_vm0, %vm1005_vm0  ;;  %1082 = vst [vmem:[%s2719_s4 + $0x30] sm:$0xf] %v1648_v1  ;;  %v1016_v36 = vld [vmem:[#allocation3 + $0x8] sm:$0xf]  ;;  %v1017_v38 = vld [vmem:[#allocation3 + $0xc] sm:$0xf] }
 0x1a5   : > { %1084 = vst [vmem:[%s2719_s4 + $0x38] sm:$0xf] %v1648_v1  ;;  %1134 = vst [vmem:[%s2716_s25 + $0x20] sm:$0xf] %v1648_v1  ;;  %v1023_v8 = vsel %vm2778_vm1, %v2766_v60, 0  ;;  %v1024_v9 = vsel %vm2778_vm1, %v2768_v61, 0 }
 0x1a6   : > { %1136 = vst [vmem:[%s2716_s25 + $0x28] sm:$0xf] %v1648_v1  ;;  %1138 = vst [vmem:[%s2716_s25 + $0x30] sm:$0xf] %v1648_v1  ;;  %v1025_v10 = vsel %vm2778_vm1, %v2770_v62, 0  ;;  %v1026_v11 = vsel %vm2778_vm1, %v2772_v63, 0  ;;  %v1640_v12 = vcombine.low %v1023_v8, %v1023_v8  ;;  %v1641_v13 = vcombine.low %v1024_v9, %v1024_v9 }
 0x1a7   : > { %1140 = vst [vmem:[%s2716_s25 + $0x38] sm:$0xf] %v1648_v1  ;;  %1190 = vst [vmem:[%s2722_s24 + $0x20] sm:$0xf] %v1648_v1  ;;  %v1642_v14 = vcombine.low %v1025_v10, %v1025_v10  ;;  %v1643_v15 = vcombine.low %v1026_v11, %v1026_v11  ;;  %v1027_v16 = vsel %vm2778_vm1, %v2774_v3, 0  ;;  %v1028_v17 = vsel %vm2778_vm1, %v2776_v4, 0 }
 0x1a8   : > { %1192 = vst [vmem:[%s2722_s24 + $0x28] sm:$0xf] %v1648_v1  ;;  %1194 = vst [vmem:[%s2722_s24 + $0x30] sm:$0xf] %v1648_v1  ;;  %v1029_v18 = vsel %vm2778_vm1, %v2782_v6, 0  ;;  %v1030_v19 = vsel %vm2778_vm1, %v2784_v7, 0  ;;  %v1644_v20 = vcombine.low %v1027_v16, %v1027_v16  ;;  %v1645_v21 = vcombine.low %v1028_v17, %v1028_v17 }
 0x1a9   : > { %1196 = vst [vmem:[%s2722_s24 + $0x38] sm:$0xf] %v1648_v1  ;;  %1246 = vst [vmem:[%s2725_s5 + $0x20] sm:$0xf] %v1648_v1  ;;  %v1646_v22 = vcombine.low %v1029_v18, %v1029_v18  ;;  %v1647_v23 = vcombine.low %v1030_v19, %v1030_v19  ;;  %v1086_v24 = vsel %vm2778_vm1, 0, %v2766_v60  ;;  %v1087_v25 = vsel %vm2778_vm1, 0, %v2768_v61 }
 0x1aa   : > { %1248 = vst [vmem:[%s2725_s5 + $0x28] sm:$0xf] %v1648_v1  ;;  %1250 = vst [vmem:[%s2725_s5 + $0x30] sm:$0xf] %v1648_v1  ;;  %v1088_v26 = vsel %vm2778_vm1, 0, %v2770_v62  ;;  %v1089_v27 = vsel %vm2778_vm1, 0, %v2772_v63  ;;  %v1650_v30 = vcombine.low %v1086_v24, %v1086_v24  ;;  %v1651_v31 = vcombine.low %v1087_v25, %v1087_v25 }
 0x1ab   : > { %1252 = vst [vmem:[%s2725_s5 + $0x38] sm:$0xf] %v1648_v1  ;;  %1079 = vst [vmem:[%s2719_s4 + $0x24] sm:$0xf] %v1649_v2  ;;  %v1652_v32 = vcombine.low %v1088_v26, %v1088_v26  ;;  %v1653_v34 = vcombine.low %v1089_v27, %v1089_v27  ;;  %v1090_v39 = vsel %vm2778_vm1, 0, %v2774_v3  ;;  %v1091_v40 = vsel %vm2778_vm1, 0, %v2776_v4 }
 0x1ac   : > { %1081 = vst [vmem:[%s2719_s4 + $0x2c] sm:$0xf] %v1649_v2  ;;  %1083 = vst [vmem:[%s2719_s4 + $0x34] sm:$0xf] %v1649_v2  ;;  %v1092_v42 = vsel %vm2778_vm1, 0, %v2782_v6  ;;  %v1093_v43 = vsel %vm2778_vm1, 0, %v2784_v7  ;;  %v1654_v46 = vcombine.low %v1090_v39, %v1090_v39  ;;  %v1655_v33 = vcombine.low %v1091_v40, %v1091_v40 }
 0x1ad   : > { %1085 = vst [vmem:[%s2719_s4 + $0x3c] sm:$0xf] %v1649_v2  ;;  %1135 = vst [vmem:[%s2716_s25 + $0x24] sm:$0xf] %v1649_v2  ;;  %v1018_v44 = vld [vmem:[#allocation3 + $0x10] sm:$0xf]  ;;  %v1656_v41 = vcombine.low %v1092_v42, %v1092_v42  ;;  %v1657_v47 = vcombine.low %v1093_v43, %v1093_v43 }
 0x1ae   : > { %1137 = vst [vmem:[%s2716_s25 + $0x2c] sm:$0xf] %v1649_v2  ;;  %1139 = vst [vmem:[%s2716_s25 + $0x34] sm:$0xf] %v1649_v2  ;;  %v1019_v48 = vld [vmem:[#allocation3 + $0x14] sm:$0xf] }
 0x1af   : > { %1141 = vst [vmem:[%s2716_s25 + $0x3c] sm:$0xf] %v1649_v2  ;;  %1191 = vst [vmem:[%s2722_s24 + $0x24] sm:$0xf] %v1649_v2  ;;  %v1020_v29 = vld [vmem:[#allocation3 + $0x18] sm:$0xf] }
 0x1b0   : > { %1193 = vst [vmem:[%s2722_s24 + $0x2c] sm:$0xf] %v1649_v2  ;;  %1195 = vst [vmem:[%s2722_s24 + $0x34] sm:$0xf] %v1649_v2  ;;  %v1021_v50 = vld [vmem:[#allocation3 + $0x1c] sm:$0xf] }
 0x1b1   : > { %1197 = vst [vmem:[%s2722_s24 + $0x3c] sm:$0xf] %v1649_v2  ;;  %1247 = vst [vmem:[%s2725_s5 + $0x24] sm:$0xf] %v1649_v2  ;;  %v1142_v37 = vsel %vm2778_vm1, %v1014_v28, 0  ;;  %v1143_v51 = vsel %vm2778_vm1, %v1015_v35, 0 }
 0x1b2   : > { %1249 = vst [vmem:[%s2725_s5 + $0x2c] sm:$0xf] %v1649_v2  ;;  %1251 = vst [vmem:[%s2725_s5 + $0x34] sm:$0xf] %v1649_v2  ;;  %v1144_v52 = vsel %vm2778_vm1, %v1016_v36, 0  ;;  %v1145_v54 = vsel %vm2778_vm1, %v1017_v38, 0  ;;  %v1658_v55 = vcombine.low %v1142_v37, %v1142_v37  ;;  %v1659_v56 = vcombine.low %v1143_v51, %v1143_v51 }
 0x1b3   : > { %1253 = vst [vmem:[%s2725_s5 + $0x3c] sm:$0xf] %v1649_v2  ;;  %1070 = vst [vmem:[%s2719_s4] sm:$0xf] %v1640_v12  ;;  %v1660_v49 = vcombine.low %v1144_v52, %v1144_v52  ;;  %v1661_v58 = vcombine.low %v1145_v54, %v1145_v54  ;;  %v1146_v57 = vsel %vm2778_vm1, %v1018_v44, 0  ;;  %v1147_v59 = vsel %vm2778_vm1, %v1019_v48, 0 }
 0x1b4   : > { %1071 = vst [vmem:[%s2719_s4 + $0x4] sm:$0xf] %v1641_v13  ;;  %1072 = vst [vmem:[%s2719_s4 + $0x8] sm:$0xf] %v1642_v14  ;;  %v1148_v45 = vsel %vm2778_vm1, %v1020_v29, 0  ;;  %v1149_v53 = vsel %vm2778_vm1, %v1021_v50, 0  ;;  %v1662_v60 = vcombine.low %v1146_v57, %v1146_v57  ;;  %v1663_v61 = vcombine.low %v1147_v59, %v1147_v59 }
 0x1b5   : > { %1073 = vst [vmem:[%s2719_s4 + $0xc] sm:$0xf] %v1643_v15  ;;  %1074 = vst [vmem:[%s2719_s4 + $0x10] sm:$0xf] %v1644_v20  ;;  %v1664_v62 = vcombine.low %v1148_v45, %v1148_v45  ;;  %v1665_v63 = vcombine.low %v1149_v53, %v1149_v53  ;;  %v1198_v0 = vsel %vm2778_vm1, 0, %v1014_v28  ;;  %v1199_v1 = vsel %vm2778_vm1, 0, %v1015_v35 }
 0x1b6   : > { %1075 = vst [vmem:[%s2719_s4 + $0x14] sm:$0xf] %v1645_v21  ;;  %1076 = vst [vmem:[%s2719_s4 + $0x18] sm:$0xf] %v1646_v22  ;;  %v1200_v2 = vsel %vm2778_vm1, 0, %v1016_v36  ;;  %v1201_v3 = vsel %vm2778_vm1, 0, %v1017_v38  ;;  %v1666_v4 = vcombine.low %v1198_v0, %v1198_v0  ;;  %v1667_v6 = vcombine.low %v1199_v1, %v1199_v1 }
 0x1b7   : > { %1077 = vst [vmem:[%s2719_s4 + $0x1c] sm:$0xf] %v1647_v23  ;;  %1126 = vst [vmem:[%s2716_s25] sm:$0xf] %v1650_v30  ;;  %v1668_v7 = vcombine.low %v1200_v2, %v1200_v2  ;;  %v1669_v8 = vcombine.low %v1201_v3, %v1201_v3  ;;  %v1202_v9 = vsel %vm2778_vm1, 0, %v1018_v44  ;;  %v1203_v10 = vsel %vm2778_vm1, 0, %v1019_v48 }
 0x1b8   : > { %1127 = vst [vmem:[%s2716_s25 + $0x4] sm:$0xf] %v1651_v31  ;;  %1128 = vst [vmem:[%s2716_s25 + $0x8] sm:$0xf] %v1652_v32  ;;  %v1204_v11 = vsel %vm2778_vm1, 0, %v1020_v29  ;;  %v1205_v12 = vsel %vm2778_vm1, 0, %v1021_v50  ;;  %v1670_v13 = vcombine.low %v1202_v9, %v1202_v9  ;;  %v1671_v14 = vcombine.low %v1203_v10, %v1203_v10 }
 0x1b9   : > { %1129 = vst [vmem:[%s2716_s25 + $0xc] sm:$0xf] %v1653_v34  ;;  %1130 = vst [vmem:[%s2716_s25 + $0x10] sm:$0xf] %v1654_v46  ;;  %v1672_v15 = vcombine.low %v1204_v11, %v1204_v11  ;;  %v1673_v16 = vcombine.low %v1205_v12, %v1205_v12 }
 0x1ba   : > { %1131 = vst [vmem:[%s2716_s25 + $0x14] sm:$0xf] %v1655_v33  ;;  %1132 = vst [vmem:[%s2716_s25 + $0x18] sm:$0xf] %v1656_v41 }
 0x1bb   : > { %1133 = vst [vmem:[%s2716_s25 + $0x1c] sm:$0xf] %v1657_v47  ;;  %1182 = vst [vmem:[%s2722_s24] sm:$0xf] %v1658_v55 }
 0x1bc   : > { %1183 = vst [vmem:[%s2722_s24 + $0x4] sm:$0xf] %v1659_v56  ;;  %1184 = vst [vmem:[%s2722_s24 + $0x8] sm:$0xf] %v1660_v49 }
 0x1bd   : > { %1185 = vst [vmem:[%s2722_s24 + $0xc] sm:$0xf] %v1661_v58  ;;  %1186 = vst [vmem:[%s2722_s24 + $0x10] sm:$0xf] %v1662_v60 }
 0x1be   : > { %1187 = vst [vmem:[%s2722_s24 + $0x14] sm:$0xf] %v1663_v61  ;;  %1188 = vst [vmem:[%s2722_s24 + $0x18] sm:$0xf] %v1664_v62 }
 0x1bf   : > { %1189 = vst [vmem:[%s2722_s24 + $0x1c] sm:$0xf] %v1665_v63  ;;  %1238 = vst [vmem:[%s2725_s5] sm:$0xf] %v1666_v4 }
 0x1c0   : > { %1239 = vst [vmem:[%s2725_s5 + $0x4] sm:$0xf] %v1667_v6  ;;  %1240 = vst [vmem:[%s2725_s5 + $0x8] sm:$0xf] %v1668_v7 }
 0x1c1   : > { %1241 = vst [vmem:[%s2725_s5 + $0xc] sm:$0xf] %v1669_v8  ;;  %1242 = vst [vmem:[%s2725_s5 + $0x10] sm:$0xf] %v1670_v13 }
 0x1c2   : > { %1243 = vst [vmem:[%s2725_s5 + $0x14] sm:$0xf] %v1671_v14  ;;  %1244 = vst [vmem:[%s2725_s5 + $0x18] sm:$0xf] %v1672_v15 }
 0x1c3   : > { %1245 = vst [vmem:[%s2725_s5 + $0x1c] sm:$0xf] %v1673_v16 }
 0x1c4 PF: > { %s3180_s15 = sld [smem:[#allocation27_spill]]  ;;  %s1299_s21 = sshll.u32 %s2719_s4, 4  ;;  %s2940_s21 = int_to_ptr.vmem [resolvable:$true] %s1299_s21 }
 0x1c5   : > { %s3182_s29 = sld [smem:[#allocation39_spill]]  ;;  %s2944_s12 = scalar_lea.sflag [#allocation14], %s401_s27 }
 0x1c6   : > { %s2176_s22 = scalar_lea.vmem %s2940_s21, 1024  ;;  %s2403_s3 = smov [#allocation13]  }
 0x1c7   : > { %p2177_p4 = scmp.ne.s32.totalorder %s2940_s21, %s2176_s22  ;;  %s2180_s16 = sshll.u32 %s2403_s3, 4  ;;  %s2181_s16 = int_to_ptr.vmem [resolvable:$false] %s2180_s16 }
 0x1c8   : > { %s2182_s28 = scalar_lea.vmem %s2181_s16, 2048  ;;  %p2183_p5 = scmp.lt.s32.totalorder %s2940_s21, %s2181_s16 }
 0x1c9   : > { %p2178_p6 = pnand %p2177_p4, %p2532_p7  ;;  %p2184_p8 = scmp.lt.s32.totalorder %s2182_s28, %s2176_s22 }
 0x1ca   : > { %s2931_s26 = sshll.u32 %s3180_s15, 10 }
 0x1cb   : > { %s2937_s17 = scalar_lea.hbm %s3182_s29, %s2931_s26  ;;  %p2179_p13 = pneg %p2178_p6 }
 0x1cc   : > { %p2185_p1 = por %p2184_p8, %p2183_p5 }
 0x1ce   : > { %p2186_p11 = pnand %p2185_p1, %p2179_p13 }
 0x1d0   : > { %2189 = shalt.err (!%p2186_p11)
}
 0x1d1   : > { %s2190_s20 = scalar_lea.hbm %s2937_s17, 1024  ;;  %s2194_s15 = scalar_lea.hbm %s3182_s29, 2048 }
 0x1d2   : > { %p2191_p12 = scmp.ne.s32.totalorder %s2937_s17, %s2190_s20  ;;  %p2195_p10 = scmp.lt.s32.totalorder %s2937_s17, %s3182_s29 }
 0x1d3   : > { %p2196_p2 = scmp.lt.s32.totalorder %s2194_s15, %s2190_s20 }
 0x1d4   : > { %p2192_p0 = pnand %p2191_p12, %p2532_p7 }
 0x1d5   : > { %p2197_p4 = por %p2196_p2, %p2195_p10 }
 0x1d6   : > { %p2193_p3 = pneg %p2192_p0 }
 0x1d8   : > { %p2198_p6 = pnand %p2197_p4, %p2193_p3 }
 0x1da   : > { %2201 = shalt.err (!%p2198_p6)
}
 0x1db   : > { %s3135_s22 = smov 64   ;;  %s2405_s3 = smov 4  }
 0x1dc   : > { %1909 = dma.vmem_to_hbm [thread:$0]  (%p2532_p7), %s2940_s21, 1024, %s2937_s17, %s2944_s12, %s3135_s22, %s3135_s22, %s2405_s3  }
 0x1dd   : > { %s3183_s20 = sld [smem:[#allocation38_spill]]  ;;  %s1283_s4 = sshll.u32 %s2716_s25, 4  ;;  %s2977_s4 = int_to_ptr.vmem [resolvable:$true] %s1283_s4 }
 0x1de   : > { %s3184_s23 = sld [smem:[#allocation40_spill]]  ;;  %s1255_s1 = scalar_lea.sflag [#allocation6], %s2672_s7 }
 0x1df   : > { %s2202_s29 = scalar_lea.vmem %s2977_s4, 1024  ;;  %s2406_s17 = smov [#allocation12]  }
 0x1e0   : > { %p2203_p13 = scmp.ne.s32.totalorder %s2977_s4, %s2202_s29  ;;  %s2206_s21 = sshll.u32 %s2406_s17, 4  ;;  %s2207_s21 = int_to_ptr.vmem [resolvable:$false] %s2206_s21 }
 0x1e1   : > { %s2208_s25 = scalar_lea.vmem %s2207_s21, 2048  ;;  %p2209_p1 = scmp.lt.s32.totalorder %s2977_s4, %s2207_s21 }
 0x1e2   : > { %p2204_p5 = pnand %p2203_p13, %p2532_p7  ;;  %p2210_p11 = scmp.lt.s32.totalorder %s2208_s25, %s2202_s29 }
 0x1e3   : > { %s2974_s27 = scalar_lea.hbm %s3183_s20, %s2931_s26 }
 0x1e4   : > { %s2983_s0 = scalar_lea.hbm %s3184_s23, %s2931_s26  ;;  %p2205_p8 = pneg %p2204_p5 }
 0x1e5   : > { %p2211_p12 = por %p2210_p11, %p2209_p1 }
 0x1e7   : > { %p2212_p0 = pnand %p2211_p12, %p2205_p8 }
 0x1e9   : > { %2215 = shalt.err (!%p2212_p0)
}
 0x1ea   : > { %s2216_s16 = scalar_lea.hbm %s2974_s27, 1024  ;;  %s2220_s8 = scalar_lea.hbm %s3183_s20, 2048 }
 0x1eb   : > { %p2217_p3 = scmp.ne.s32.totalorder %s2974_s27, %s2216_s16  ;;  %p2221_p4 = scmp.lt.s32.totalorder %s2974_s27, %s3183_s20 }
 0x1ec   : > { %p2222_p6 = scmp.lt.s32.totalorder %s2220_s8, %s2216_s16 }
 0x1ed   : > { %p2218_p10 = pnand %p2217_p3, %p2532_p7 }
 0x1ee   : > { %p2223_p13 = por %p2222_p6, %p2221_p4 }
 0x1ef   : > { %p2219_p2 = pneg %p2218_p10 }
 0x1f1   : > { %p2224_p5 = pnand %p2223_p13, %p2219_p2 }
 0x1f3   : > { %2227 = shalt.err (!%p2224_p5)
}
 0x1f4   : > { %s3185_s29 = smov 64   ;;  %s1315_s21 = sshll.u32 %s2722_s24, 4  ;;  %s3010_s21 = int_to_ptr.vmem [resolvable:$true] %s1315_s21 }
 0x1f5   : > { %1908 = dma.vmem_to_hbm [thread:$0]  (%p2532_p7), %s2977_s4, 1024, %s2974_s27, %s1255_s1, %s3185_s29, %s3185_s29, %s2405_s3  }
 0x1f6   : > { %s3186_s16 = sld [smem:[#allocation41_spill]]  ;;  %s2228_s8 = scalar_lea.vmem %s3010_s21, 1024 }
 0x1f7   : > { %p2229_p8 = scmp.ne.s32.totalorder %s3010_s21, %s2228_s8  ;;  %s2407_s17 = smov [#allocation15]  }
 0x1f8   : > { %s2232_s20 = sshll.u32 %s2407_s17, 4  ;;  %s2233_s20 = int_to_ptr.vmem [resolvable:$false] %s2232_s20 }
 0x1f9   : > { %p2230_p1 = pnand %p2229_p8, %p2532_p7  ;;  %s2234_s1 = scalar_lea.vmem %s2233_s20, 2048 }
 0x1fa   : > { %p2235_p12 = scmp.lt.s32.totalorder %s3010_s21, %s2233_s20  ;;  %p2236_p0 = scmp.lt.s32.totalorder %s2234_s1, %s2228_s8 }
 0x1fb   : > { %p2231_p11 = pneg %p2230_p1 }
 0x1fc   : > { %s3187_s28 = smov %s3186_s16  ;;  %s3016_s15 = scalar_lea.hbm %s3186_s16, %s2931_s26 }
 0x1fd   : > { %p2237_p3 = por %p2236_p0, %p2235_p12 }
 0x1ff   : > { %p2238_p10 = pnand %p2237_p3, %p2231_p11 }
 0x201   : > { %2241 = shalt.err (!%p2238_p10)
}
 0x202   : > { %s2242_s24 = scalar_lea.hbm %s2983_s0, 1024  ;;  %s2246_s4 = scalar_lea.hbm %s3184_s23, 2048 }
 0x203   : > { %p2243_p2 = scmp.ne.s32.totalorder %s2983_s0, %s2242_s24  ;;  %p2247_p13 = scmp.lt.s32.totalorder %s2983_s0, %s3184_s23 }
 0x204   : > { %p2248_p5 = scmp.lt.s32.totalorder %s2246_s4, %s2242_s24 }
 0x205   : > { %p2244_p4 = pnand %p2243_p2, %p2532_p7 }
 0x206   : > { %p2249_p8 = por %p2248_p5, %p2247_p13 }
 0x207   : > { %p2245_p6 = pneg %p2244_p4 }
 0x209   : > { %p2250_p1 = pnand %p2249_p8, %p2245_p6 }
 0x20b   : > { %2253 = shalt.err (!%p2250_p1)
}
 0x20c   : > { %1910 = dma.vmem_to_hbm [thread:$0]  (%p2532_p7), %s3010_s21, 1024, %s2983_s0, %s2944_s12, %s3185_s29, %s3185_s29, %s2405_s3  }
 0x20d   : > { %s1331_s20 = sshll.u32 %s2725_s5, 4  ;;  %s1270_s16 = scalar_lea.sflag [#allocation17], %s2672_s7  ;;  %s3043_s20 = int_to_ptr.vmem [resolvable:$true] %s1331_s20 }
 0x20e   : > { %s2254_s8 = scalar_lea.vmem %s3043_s20, 1024  ;;  %s2408_s17 = smov [#allocation16]  }
 0x20f   : > { %p2255_p11 = scmp.ne.s32.totalorder %s3043_s20, %s2254_s8  ;;  %s2258_s1 = sshll.u32 %s2408_s17, 4  ;;  %s2259_s1 = int_to_ptr.vmem [resolvable:$false] %s2258_s1 }
 0x210   : > { %s2260_s24 = scalar_lea.vmem %s2259_s1, 2048  ;;  %p2261_p3 = scmp.lt.s32.totalorder %s3043_s20, %s2259_s1 }
 0x211   : > { %p2256_p12 = pnand %p2255_p11, %p2532_p7  ;;  %p2262_p10 = scmp.lt.s32.totalorder %s2260_s24, %s2254_s8 }
 0x213   : > { %p2257_p0 = pneg %p2256_p12  ;;  %p2263_p2 = por %p2262_p10, %p2261_p3 }
 0x215   : > { %p2264_p4 = pnand %p2263_p2, %p2257_p0 }
 0x217   : > { %2267 = shalt.err (!%p2264_p4)
}
 0x218   : > { %s2268_s0 = scalar_lea.hbm %s3016_s15, 1024  ;;  %s2272_s12 = scalar_lea.hbm %s3187_s28, 2048 }
 0x219   : > { %p2269_p6 = scmp.ne.s32.totalorder %s3016_s15, %s2268_s0  ;;  %p2273_p8 = scmp.lt.s32.totalorder %s3016_s15, %s3187_s28 }
 0x21a   : > { %p2274_p1 = scmp.lt.s32.totalorder %s2272_s12, %s2268_s0 }
 0x21b   : > { %p2270_p13 = pnand %p2269_p6, %p2532_p7 }
 0x21c   : > { %p2275_p11 = por %p2274_p1, %p2273_p8 }
 0x21d   : > { %p2271_p5 = pneg %p2270_p13 }
 0x21f   : > { %p2276_p12 = pnand %p2275_p11, %p2271_p5 }
 0x221   : > { %2279 = shalt.err (!%p2276_p12)
}
 0x222   : > { %1911 = dma.vmem_to_hbm [thread:$0]  (%p2532_p7), %s3043_s20, 1024, %s3016_s15, %s1270_s16, %s3185_s29, %s3185_s29, %s2405_s3  }
 0x223 PF: > { %s3188_s27 = sld [smem:[#allocation25_spill]]  ;;  %p1948_p0 = scmp.ge.s32.totalorder %s2394_s19, 2 }
 0x225   : > { %p1931_p3 = pnand %p1948_p0, %p2537_p9 }
 0x227   : > { %p1932_p10 = pneg %p1931_p3 }
 0x229   : > { %s1346_s22 = sand.u32 1, %s3188_s27  }
 0x22a   : > { %s1347_s25 = scalar_lea.sflag [#allocation6], %s1346_s22 }
 0x22b   : > { %2341 = dma.done.wait (%p1932_p10), %s1347_s25, 1024  }
 0x22c   : > { %2343 = vsyncadd (%p1932_p10), %s1347_s25, 4294966272  ;;  %s3190_s2 = sadd.s32 4294967294, %s2394_s19  }
 0x22d   : > { %s1355_s8 = sand.u32 1, %s3190_s2  }
 0x22e   : > { %s1356_s17 = scalar_lea.sflag [#allocation14], %s1355_s8 }
 0x22f   : > { %2345 = dma.done.wait (%p1932_p10), %s1356_s17, 2048  }
 0x230   : > { %2347 = vsyncadd (%p1932_p10), %s1356_s17, 4294965248  ;;  %s1374_s1 = scalar_lea.sflag [#allocation17], %s1346_s22 }
 0x231   : > { %2349 = dma.done.wait (%p1932_p10), %s1374_s1, 1024  }
 0x232   : > { %2351 = vsyncadd (%p1932_p10), %s1374_s1, 4294966272  ;;  %s36_s19 = sadd.s32 1, %s2394_s19   ;;  %s3191_s15 = sld [smem:[#allocation28_spill]] }
 0x233   : > { %p33_p7 = scmp.ge.s32.totalorder %s36_s19, 10   ;;  %s3192_s17 = sld [smem:[#allocation31_spill]] }
 0x234   : > { %s3193_s3 = smov %s3207_s30  ;;  %s3194_s30 = smov %s2358_s10 }
 0x235   : > { %s3195_s10 = smov %s2362_s11  ;;  %s3196_s11 = smov %s2604_s9 }
 0x236   : > { %s3197_s12 = smov %s2370_s13  ;;  %s3198_s13 = smov %s2374_s14 }
 0x237   : > { %s3199_s14 = smov %s2607_s6  ;;  %s3200_s16 = smov %s2390_s18 }
 0x238   : > { %s3201_s18 = smov %s3193_s3  ;;  %35 = sbr.rel (!%p33_p7) target bundleno = 27 (0x1b), region = 171 }
 0x23d   :  { %1379 = vsyncpa [#allocation5], 1 }
 0x23e   :  { %1381 = vsyncpa [#allocation5 + $0x1], 1 }
 0x23f   :  { %1382 = vsyncpa [#allocation8], 1 }
 0x240   :  { %1384 = vsyncpa [#allocation8 + $0x1], 1 }
 0x241   :  { %1385 = vsyncpa [#allocation11], 1 }
 0x242   :  { %1386 = vsyncpa [#allocation6], 1 }
 0x243   :  { %1388 = vsyncpa [#allocation6 + $0x1], 1 }
 0x244   :  { %1389 = vsyncpa [#allocation14], 1 }
 0x245   :  { %1391 = vsyncpa [#allocation14 + $0x1], 1 }
 0x246   :  { %1392 = vsyncpa [#allocation17], 1 }
 0x247   :  { %1394 = vsyncpa [#allocation17 + $0x1], 1 }

</bundles_post_ra>
